<compile_context>
chip_gen: v6e
topology: v6e:2x2x1
jax: 0.10.0
libtpu: 0.0.40
codegen_flags: <defaults>
</compile_context>

<pallas_src>
import functools

import jax
import jax.numpy as jnp
from jax import lax
from jax.experimental import pallas as pl
from jax.experimental.pallas import tpu as pltpu

HIDDEN = 256          # fused width: [mu-branch(128) | log_var-branch(128)]
HALF = HIDDEN // 2


def planning_kernel(x_ref, eps_ref, w_ref, b_ref, out_ref):
    """x_ref:[1,256] eps_ref:[1,128] w_ref:[6,256,256] b_ref:[6,1,256] out:[3,128]."""
    f32 = jnp.float32

    # lane mask: first 128 lanes belong to the mu (tanh) branch, last 128 to
    # the log_var (relu) branch.  Hoisted once, reused for layers 1-4.
    lane = lax.broadcasted_iota(jnp.int32, (1, HIDDEN), 1)
    is_mu = lane < HALF

    def layer(x, i):
        return jnp.dot(x, w_ref[i], preferred_element_type=f32) + b_ref[i]

    # Layer 0: fused fcs / fcs_ (block-diagonal weights); both halves ReLU.
    # Output z = [relu(fcs(s)) | relu(fcs_(s_next))] == cat([s, s_next], -1).
    z = jnp.maximum(layer(x_ref[...], 0), 0.0)

    # Layers 1-4: fused mu/log_var trunks (block-diagonal 256x256 weights).
    for i in range(1, 5):
        z = layer(z, i)
        z = jnp.where(is_mu, jnp.tanh(z), jnp.maximum(z, 0.0))

    # Layer 5: output heads, no activation.  mu lives in lanes [0,128),
    # log_var in lanes [128,256); only the first n_actions of each are real.
    z = layer(z, 5)

    mu = z[:, :HALF]
    log_var = z[:, HALF:]

    # reparameterize: std = exp(0.5*logvar) + 1e-5 ; act = mu + std * eps
    std = jnp.exp(0.5 * log_var) + 1e-5
    act = mu + std * eps_ref[...]

    out_ref[...] = jnp.concatenate([act, mu, log_var], axis=0)


# ---------------------------------------------------------------------------
# Parameters (synthetic), stored in PyTorch-like per-layer form, weights [in,out].
# ---------------------------------------------------------------------------
def init_params(key, n_states, n_actions):
    ks = iter(jax.random.split(key, 24))

    def lin(fin, fout, scale=0.1):
        w = scale * jax.random.normal(next(ks), (fin, fout), jnp.float32)
        b = scale * jax.random.normal(next(ks), (1, fout), jnp.float32)
        return w, b

    p = {}
    p["fcs_w"], p["fcs_b"] = lin(n_states, 128)
    p["fcsn_w"], p["fcsn_b"] = lin(n_states, 128)
    for head in ("mu", "lv"):
        p[f"{head}_w1"], p[f"{head}_b1"] = lin(256, 128)
        for l in (2, 3, 4):
            p[f"{head}_w{l}"], p[f"{head}_b{l}"] = lin(128, 128)
        p[f"{head}_w5"], p[f"{head}_b5"] = lin(128, n_actions)
    return p


def pack_params(p, n_states, n_actions):
    """One-time packing into [6,256,256] weights and [6,1,256] biases."""
    assert 2 * n_states <= HIDDEN and n_actions <= HALF
    W = jnp.zeros((6, HIDDEN, HIDDEN), jnp.float32)
    B = jnp.zeros((6, 1, HIDDEN), jnp.float32)

    # layer 0: block-diag fcs / fcs_
    W = W.at[0, :n_states, :HALF].set(p["fcs_w"])
    W = W.at[0, n_states:2 * n_states, HALF:].set(p["fcsn_w"])
    B = B.at[0, :, :HALF].set(p["fcs_b"])
    B = B.at[0, :, HALF:].set(p["fcsn_b"])

    # layer 1: both heads consume the full 256-wide cat -> side-by-side
    W = W.at[1, :, :HALF].set(p["mu_w1"])
    W = W.at[1, :, HALF:].set(p["lv_w1"])
    B = B.at[1, :, :HALF].set(p["mu_b1"])
    B = B.at[1, :, HALF:].set(p["lv_b1"])

    # layers 2-4: block-diagonal (mu top-left, lv bottom-right)
    for l in (2, 3, 4):
        W = W.at[l, :HALF, :HALF].set(p[f"mu_w{l}"])
        W = W.at[l, HALF:, HALF:].set(p[f"lv_w{l}"])
        B = B.at[l, :, :HALF].set(p[f"mu_b{l}"])
        B = B.at[l, :, HALF:].set(p[f"lv_b{l}"])

    # layer 5: block-diagonal, n_actions columns used per head (rest zero pad)
    W = W.at[5, :HALF, :n_actions].set(p["mu_w5"])
    W = W.at[5, HALF:, HALF:HALF + n_actions].set(p["lv_w5"])
    B = B.at[5, :, :n_actions].set(p["mu_b5"])
    B = B.at[5, :, HALF:HALF + n_actions].set(p["lv_b5"])
    return W, B


# ---------------------------------------------------------------------------
# Forward wrapper
# ---------------------------------------------------------------------------
@functools.partial(jax.jit, static_argnames=("n_actions",))
def planning_forward(s, s_next, eps, W, B, *, n_actions):
    n_states = s.shape[-1]

    # Mirrors torch forward's float()+unsqueeze(0); pack [s | s_next] into the
    # zero-padded 256-lane kernel input.
    x = jnp.zeros((1, HIDDEN), jnp.float32)
    x = x.at[0, :n_states].set(s.astype(jnp.float32).reshape(-1))
    x = x.at[0, n_states:2 * n_states].set(s_next.astype(jnp.float32).reshape(-1))

    eps_pad = jnp.zeros((1, HALF), jnp.float32)
    eps_pad = eps_pad.at[0, :n_actions].set(eps.astype(jnp.float32).reshape(-1))

    vmem = pl.BlockSpec(memory_space=pltpu.MemorySpace.VMEM)
    out = pl.pallas_call(
        planning_kernel,
        out_shape=jax.ShapeDtypeStruct((3, HALF), jnp.float32),
        in_specs=[vmem, vmem, vmem, vmem],
        out_specs=vmem,
    )(x, eps_pad, W, B)

    act = out[0:1, :n_actions]
    mu = out[1:2, :n_actions]
    log_var = out[2:3, :n_actions]
    return act, mu, log_var


# ---------------------------------------------------------------------------
# Pure-JAX reference (unpacked params), matching the PyTorch semantics.
# ---------------------------------------------------------------------------
def reference_forward(s, s_next, eps, p):
    s = s.astype(jnp.float32).reshape(1, -1)
    s_next = s_next.astype(jnp.float32).reshape(1, -1)
    relu = lambda x: jnp.maximum(x, 0.0)

    h_s = relu(s @ p["fcs_w"] + p["fcs_b"])
    h_sn = relu(s_next @ p["fcsn_w"] + p["fcsn_b"])
    cat = jnp.concatenate([h_s, h_sn], axis=-1)

    h = jnp.tanh(cat @ p["mu_w1"] + p["mu_b1"])
    h = jnp.tanh(h @ p["mu_w2"] + p["mu_b2"])
    h = jnp.tanh(h @ p["mu_w3"] + p["mu_b3"])
    h = jnp.tanh(h @ p["mu_w4"] + p["mu_b4"])
    mu = h @ p["mu_w5"] + p["mu_b5"]

    g = relu(cat @ p["lv_w1"] + p["lv_b1"])
    g = relu(g @ p["lv_w2"] + p["lv_b2"])
    g = relu(g @ p["lv_w3"] + p["lv_b3"])
    g = relu(g @ p["lv_w4"] + p["lv_b4"])
    log_var = g @ p["lv_w5"] + p["lv_b5"]

    std = jnp.exp(0.5 * log_var) + 1e-5
    act = mu + std * eps
    return act, mu, log_var


if __name__ == "__main__":
    n_states, n_actions = 32, 8

    key = jax.random.PRNGKey(0)
    k_param, k_s, k_sn, k_eps = jax.random.split(key, 4)

    params = init_params(k_param, n_states, n_actions)
    W, B = pack_params(params, n_states, n_actions)

    s = jax.random.normal(k_s, (n_states,), jnp.float32)
    s_next = jax.random.normal(k_sn, (n_states,), jnp.float32)
    # torch.rand_like -> uniform [0,1); drawn outside the kernel for determinism.
    eps = jax.random.uniform(k_eps, (1, n_actions), jnp.float32)

    act, mu, log_var = planning_forward(s, s_next, eps, W, B,
                                        n_actions=n_actions)
    jax.block_until_ready((act, mu, log_var))

    act_r, mu_r, lv_r = reference_forward(s, s_next, eps, params)
    assert jnp.allclose(act, act_r, atol=1e-4, rtol=1e-4)
    assert jnp.allclose(mu, mu_r, atol=1e-4, rtol=1e-4)
    assert jnp.allclose(log_var, lv_r, atol=1e-4, rtol=1e-4)

    print("KERNEL_OK")
</pallas_src>

<mosaic_0001>
module attributes {stable_mosaic.version = 11 : i64} {
  func.func @planning_kernel(%arg0: memref<1x256xf32, #tpu.memory_space<vmem>>, %arg1: memref<1x128xf32, #tpu.memory_space<vmem>>, %arg2: memref<6x256x256xf32, #tpu.memory_space<vmem>>, %arg3: memref<6x1x256xf32, #tpu.memory_space<vmem>>, %arg4: memref<3x128xf32, #tpu.memory_space<vmem>>) attributes {dimension_semantics = [], scalar_prefetch = 0 : i64, scratch_operands = 0 : i64, tpu.core_type = #tpu.core_type<tc>} {
    %0 = tpu.iota {dimensions = array<i32: 1>} : vector<1x256xi32>
    %c128_i32 = arith.constant 128 : i32
    %1 = vector.broadcast %c128_i32 : i32 to vector<1x256xi32>
    %2 = arith.cmpi slt, %0, %1 : vector<1x256xi32>
    %c0 = arith.constant 0 : index
    %c0_0 = arith.constant 0 : index
    %3 = vector.load %arg0[%c0, %c0_0] : memref<1x256xf32, #tpu.memory_space<vmem>>, vector<1x256xf32>
    %c0_1 = arith.constant 0 : index
    %c0_2 = arith.constant 0 : index
    %c0_3 = arith.constant 0 : index
    %4 = vector.load %arg2[%c0_1, %c0_2, %c0_3] : memref<6x256x256xf32, #tpu.memory_space<vmem>>, vector<1x256x256xf32>
    %5 = vector.shape_cast %4 : vector<1x256x256xf32> to vector<256x256xf32>
    %cst = arith.constant dense<0.000000e+00> : vector<1x256xf32>
    %6 = tpu.matmul %3, %5, %cst {dimension_numbers = #tpu.dot_dimension_numbers<[1], [0], [0], [1], [0, 0, 1, 1], [], []>} : vector<1x256xf32>, vector<256x256xf32>, vector<1x256xf32> -> vector<1x256xf32>
    %c0_4 = arith.constant 0 : index
    %c0_5 = arith.constant 0 : index
    %c0_6 = arith.constant 0 : index
    %7 = vector.load %arg3[%c0_4, %c0_5, %c0_6] : memref<6x1x256xf32, #tpu.memory_space<vmem>>, vector<1x1x256xf32>
    %8 = vector.shape_cast %7 : vector<1x1x256xf32> to vector<1x256xf32>
    %9 = arith.addf %6, %8 : vector<1x256xf32>
    %cst_7 = arith.constant 0.000000e+00 : f32
    %10 = vector.broadcast %cst_7 : f32 to vector<1x256xf32>
    %11 = arith.maximumf %9, %10 : vector<1x256xf32>
    %c1 = arith.constant 1 : index
    %c0_8 = arith.constant 0 : index
    %c0_9 = arith.constant 0 : index
    %12 = vector.load %arg2[%c1, %c0_8, %c0_9] : memref<6x256x256xf32, #tpu.memory_space<vmem>>, vector<1x256x256xf32>
    %13 = vector.shape_cast %12 : vector<1x256x256xf32> to vector<256x256xf32>
    %cst_10 = arith.constant dense<0.000000e+00> : vector<1x256xf32>
    %14 = tpu.matmul %11, %13, %cst_10 {dimension_numbers = #tpu.dot_dimension_numbers<[1], [0], [0], [1], [0, 0, 1, 1], [], []>} : vector<1x256xf32>, vector<256x256xf32>, vector<1x256xf32> -> vector<1x256xf32>
    %c1_11 = arith.constant 1 : index
    %c0_12 = arith.constant 0 : index
    %c0_13 = arith.constant 0 : index
    %15 = vector.load %arg3[%c1_11, %c0_12, %c0_13] : memref<6x1x256xf32, #tpu.memory_space<vmem>>, vector<1x1x256xf32>
    %16 = vector.shape_cast %15 : vector<1x1x256xf32> to vector<1x256xf32>
    %17 = arith.addf %14, %16 : vector<1x256xf32>
    %18 = math.tanh %17 : vector<1x256xf32>
    %cst_14 = arith.constant 0.000000e+00 : f32
    %19 = vector.broadcast %cst_14 : f32 to vector<1x256xf32>
    %20 = arith.maximumf %17, %19 : vector<1x256xf32>
    %21 = arith.select %2, %18, %20 : vector<1x256xi1>, vector<1x256xf32>
    %c2 = arith.constant 2 : index
    %c0_15 = arith.constant 0 : index
    %c0_16 = arith.constant 0 : index
    %22 = vector.load %arg2[%c2, %c0_15, %c0_16] : memref<6x256x256xf32, #tpu.memory_space<vmem>>, vector<1x256x256xf32>
    %23 = vector.shape_cast %22 : vector<1x256x256xf32> to vector<256x256xf32>
    %cst_17 = arith.constant dense<0.000000e+00> : vector<1x256xf32>
    %24 = tpu.matmul %21, %23, %cst_17 {dimension_numbers = #tpu.dot_dimension_numbers<[1], [0], [0], [1], [0, 0, 1, 1], [], []>} : vector<1x256xf32>, vector<256x256xf32>, vector<1x256xf32> -> vector<1x256xf32>
    %c2_18 = arith.constant 2 : index
    %c0_19 = arith.constant 0 : index
    %c0_20 = arith.constant 0 : index
    %25 = vector.load %arg3[%c2_18, %c0_19, %c0_20] : memref<6x1x256xf32, #tpu.memory_space<vmem>>, vector<1x1x256xf32>
    %26 = vector.shape_cast %25 : vector<1x1x256xf32> to vector<1x256xf32>
    %27 = arith.addf %24, %26 : vector<1x256xf32>
    %28 = math.tanh %27 : vector<1x256xf32>
    %cst_21 = arith.constant 0.000000e+00 : f32
    %29 = vector.broadcast %cst_21 : f32 to vector<1x256xf32>
    %30 = arith.maximumf %27, %29 : vector<1x256xf32>
    %31 = arith.select %2, %28, %30 : vector<1x256xi1>, vector<1x256xf32>
    %c3 = arith.constant 3 : index
    %c0_22 = arith.constant 0 : index
    %c0_23 = arith.constant 0 : index
    %32 = vector.load %arg2[%c3, %c0_22, %c0_23] : memref<6x256x256xf32, #tpu.memory_space<vmem>>, vector<1x256x256xf32>
    %33 = vector.shape_cast %32 : vector<1x256x256xf32> to vector<256x256xf32>
    %cst_24 = arith.constant dense<0.000000e+00> : vector<1x256xf32>
    %34 = tpu.matmul %31, %33, %cst_24 {dimension_numbers = #tpu.dot_dimension_numbers<[1], [0], [0], [1], [0, 0, 1, 1], [], []>} : vector<1x256xf32>, vector<256x256xf32>, vector<1x256xf32> -> vector<1x256xf32>
    %c3_25 = arith.constant 3 : index
    %c0_26 = arith.constant 0 : index
    %c0_27 = arith.constant 0 : index
    %35 = vector.load %arg3[%c3_25, %c0_26, %c0_27] : memref<6x1x256xf32, #tpu.memory_space<vmem>>, vector<1x1x256xf32>
    %36 = vector.shape_cast %35 : vector<1x1x256xf32> to vector<1x256xf32>
    %37 = arith.addf %34, %36 : vector<1x256xf32>
    %38 = math.tanh %37 : vector<1x256xf32>
    %cst_28 = arith.constant 0.000000e+00 : f32
    %39 = vector.broadcast %cst_28 : f32 to vector<1x256xf32>
    %40 = arith.maximumf %37, %39 : vector<1x256xf32>
    %41 = arith.select %2, %38, %40 : vector<1x256xi1>, vector<1x256xf32>
    %c4 = arith.constant 4 : index
    %c0_29 = arith.constant 0 : index
    %c0_30 = arith.constant 0 : index
    %42 = vector.load %arg2[%c4, %c0_29, %c0_30] : memref<6x256x256xf32, #tpu.memory_space<vmem>>, vector<1x256x256xf32>
    %43 = vector.shape_cast %42 : vector<1x256x256xf32> to vector<256x256xf32>
    %cst_31 = arith.constant dense<0.000000e+00> : vector<1x256xf32>
    %44 = tpu.matmul %41, %43, %cst_31 {dimension_numbers = #tpu.dot_dimension_numbers<[1], [0], [0], [1], [0, 0, 1, 1], [], []>} : vector<1x256xf32>, vector<256x256xf32>, vector<1x256xf32> -> vector<1x256xf32>
    %c4_32 = arith.constant 4 : index
    %c0_33 = arith.constant 0 : index
    %c0_34 = arith.constant 0 : index
    %45 = vector.load %arg3[%c4_32, %c0_33, %c0_34] : memref<6x1x256xf32, #tpu.memory_space<vmem>>, vector<1x1x256xf32>
    %46 = vector.shape_cast %45 : vector<1x1x256xf32> to vector<1x256xf32>
    %47 = arith.addf %44, %46 : vector<1x256xf32>
    %48 = math.tanh %47 : vector<1x256xf32>
    %cst_35 = arith.constant 0.000000e+00 : f32
    %49 = vector.broadcast %cst_35 : f32 to vector<1x256xf32>
    %50 = arith.maximumf %47, %49 : vector<1x256xf32>
    %51 = arith.select %2, %48, %50 : vector<1x256xi1>, vector<1x256xf32>
    %c5 = arith.constant 5 : index
    %c0_36 = arith.constant 0 : index
    %c0_37 = arith.constant 0 : index
    %52 = vector.load %arg2[%c5, %c0_36, %c0_37] : memref<6x256x256xf32, #tpu.memory_space<vmem>>, vector<1x256x256xf32>
    %53 = vector.shape_cast %52 : vector<1x256x256xf32> to vector<256x256xf32>
    %cst_38 = arith.constant dense<0.000000e+00> : vector<1x256xf32>
    %54 = tpu.matmul %51, %53, %cst_38 {dimension_numbers = #tpu.dot_dimension_numbers<[1], [0], [0], [1], [0, 0, 1, 1], [], []>} : vector<1x256xf32>, vector<256x256xf32>, vector<1x256xf32> -> vector<1x256xf32>
    %c5_39 = arith.constant 5 : index
    %c0_40 = arith.constant 0 : index
    %c0_41 = arith.constant 0 : index
    %55 = vector.load %arg3[%c5_39, %c0_40, %c0_41] : memref<6x1x256xf32, #tpu.memory_space<vmem>>, vector<1x1x256xf32>
    %56 = vector.shape_cast %55 : vector<1x1x256xf32> to vector<1x256xf32>
    %57 = arith.addf %54, %56 : vector<1x256xf32>
    %58 = vector.extract_strided_slice %57 {offsets = [0, 0], sizes = [1, 128], strides = [1, 1]} : vector<1x256xf32> to vector<1x128xf32>
    %59 = vector.extract_strided_slice %57 {offsets = [0, 128], sizes = [1, 128], strides = [1, 1]} : vector<1x256xf32> to vector<1x128xf32>
    %cst_42 = arith.constant 5.000000e-01 : f32
    %60 = vector.broadcast %cst_42 : f32 to vector<1x128xf32>
    %61 = arith.mulf %60, %59 : vector<1x128xf32>
    %62 = math.exp %61 : vector<1x128xf32>
    %cst_43 = arith.constant 9.99999974E-6 : f32
    %63 = vector.broadcast %cst_43 : f32 to vector<1x128xf32>
    %64 = arith.addf %62, %63 : vector<1x128xf32>
    %c0_44 = arith.constant 0 : index
    %c0_45 = arith.constant 0 : index
    %65 = vector.load %arg1[%c0_44, %c0_45] : memref<1x128xf32, #tpu.memory_space<vmem>>, vector<1x128xf32>
    %66 = arith.mulf %64, %65 : vector<1x128xf32>
    %67 = arith.addf %58, %66 : vector<1x128xf32>
    %68 = tpu.concatenate %67, %58, %59 in 0 : vector<1x128xf32>, vector<1x128xf32>, vector<1x128xf32> -> vector<3x128xf32>
    %c0_46 = arith.constant 0 : index
    %c0_47 = arith.constant 0 : index
    %69 = vector.load %arg4[%c0_46, %c0_47] : memref<3x128xf32, #tpu.memory_space<vmem>>, vector<3x128xf32>
    tpu.vector_store %arg4[%c0_46, %c0_47], %68 {strides = array<i32>} : memref<3x128xf32, #tpu.memory_space<vmem>>, vector<3x128xf32>,
    return
  }
}

</mosaic_0001>

<bundles_post_ra>
// kernel: planning_forward.1
= control target key start
LH: loop header
LB: loop body
LE: loop exit
PB: predicated region body
PF: predicated region fallthrough
CT: control target
= control target key end

     0   :  { %9 = vsyncpa [#allocation3], 0  ;;  %s1136_s0 = inlined_call_operand.vmem [shape: f32[1,256], index: 0, kind: input, shape index: {}]   ;;  %s1137_s1 = inlined_call_operand.vmem [shape: f32[1,128], index: 1, kind: input, shape index: {}]   ;;  %s1138_s2 = inlined_call_operand.hbm [shape: f32[6,256,256], index: 2, kind: input, shape index: {}]   ;;  %s1139_s3 = inlined_call_operand.hbm [shape: f32[6,1,256], index: 3, kind: input, shape index: {}]   ;;  %s1140_s4 = inlined_call_operand.vmem [shape: f32[3,128], index: 4, kind: output, shape index: {}]  }
   0x1   :  { %10 = vsyncpa [#allocation5], 0  ;;  %s1064_s15 = smov [#allocation2]  }
   0x2   :  { %s20_s16 = sshll.u32 %s1064_s15, 4  ;;  %s21_s16 = int_to_ptr.vmem [resolvable:$true] %s20_s16 }
   0x3   :  { %s1028_s17 = scalar_lea.vmem %s21_s16, 49152  ;;  %p1033_p1 = scmp.lt.s32.totalorder %s21_s16, %s21_s16 }
   0x4   :  { %p1029_p0 = scmp.ne.s32.totalorder %s21_s16, %s1028_s17  ;;  %p1034_p2 = scmp.lt.s32.totalorder %s1028_s17, %s1028_s17 }
   0x6   :  { %p1035_p3 = por %p1034_p2, %p1033_p1 }
   0x8   :  { %p1036_p4 = pnand %p1035_p3, %p1029_p0 }
   0xa   :  { %1039 = shalt.err (!%p1036_p4)
}
   0xb   :  { %s1065_s18 = smov 256   ;;  %s1066_s19 = smov 16  }
   0xc   :  { %26 = dma.hbm_to_vmem [thread:$0]  %s1138_s2, 49152, %s21_s16, [#allocation3], %s1065_s18, %s1065_s18, %s1066_s19  }
   0xd   :  { %s1067_s22 = smov [#allocation4]  }
   0xe   :  { %s32_s23 = sshll.u32 %s1067_s22, 4  ;;  %s33_s23 = int_to_ptr.vmem [resolvable:$true] %s32_s23 }
   0xf   :  { %s1048_s24 = scalar_lea.vmem %s33_s23, 192  ;;  %p1053_p6 = scmp.lt.s32.totalorder %s33_s23, %s33_s23 }
  0x10   :  { %p1049_p5 = scmp.ne.s32.totalorder %s33_s23, %s1048_s24  ;;  %p1054_p7 = scmp.lt.s32.totalorder %s1048_s24, %s1048_s24 }
  0x12   :  { %p1055_p8 = por %p1054_p7, %p1053_p6 }
  0x14   :  { %p1056_p9 = pnand %p1055_p8, %p1049_p5 }
  0x16   :  { %1059 = shalt.err (!%p1056_p9)
}
  0x17   :  { %s1068_s25 = smov 32   ;;  %s1069_s26 = smov 2  }
  0x18   :  { %38 = dma.hbm_to_vmem [thread:$0]  %s1139_s3, 192, %s33_s23, [#allocation5], %s1068_s25, %s1068_s25, %s1069_s26  }
  0x19   :  { %1060 = dma.done.wait [#allocation3], 49152  }
  0x1a   :  { %1061 = vsyncadd [#allocation3], 4294918144 }
  0x1b   :  { %1062 = dma.done.wait [#allocation5], 192  }
  0x1c   :  { %1063 = vsyncadd [#allocation5], 4294967104  ;;  %v82_v0 = vld [vmem:[#allocation2 + $0xf8] sm:$0xff]  ;;  %v81_v1 = vld [vmem:[#allocation2 + $0xf0] sm:$0xff]  ;;  %v117_v13 = vlaneseq  ;;  %vm993_vm0 = vcmask 1040384   ;;  %vm995_vm1 = vcmask 1041408  }
  0x1d   :  { %v80_v2 = vld [vmem:[#allocation2 + $0xe8] sm:$0xff]  ;;  %138 = vmatprep.subr.mxu0 %v82_v0  ;;  %v79_v3 = vld [vmem:[#allocation2 + $0xe0] sm:$0xff]  ;;  %v78_v4 = vld [vmem:[#allocation2 + $0xd8] sm:$0xff] }
  0x1e   :  { %139 = vmatpush1.msra.mxu0 %v81_v1  ;;  %v77_v5 = vld [vmem:[#allocation2 + $0xd0] sm:$0xff]  ;;  %v76_v6 = vld [vmem:[#allocation2 + $0xc8] sm:$0xff]  ;;  %v75_v7 = vld [vmem:[#allocation2 + $0xc0] sm:$0xff]  ;;  %v1101_v18 = vshrl.u32 %v117_v13, 7 }
  0x1f   :  { %140 = vmatprep.subr.mxu0 %v80_v2  ;;  %v74_v8 = vld [vmem:[#allocation2 + $0xb8] sm:$0xff]  ;;  %v73_v9 = vld [vmem:[#allocation2 + $0xb0] sm:$0xff]  ;;  %v72_v10 = vld [vmem:[#allocation2 + $0xa8] sm:$0xff] }
  0x20   :  { %141 = vmatpush1.msra.mxu0 %v79_v3  ;;  %v71_v11 = vld [vmem:[#allocation2 + $0xa0] sm:$0xff]  ;;  %v70_v12 = vld [vmem:[#allocation2 + $0x98] sm:$0xff]  ;;  %v69_v14 = vld [vmem:[#allocation2 + $0x90] sm:$0xff]  ;;  %v1104_v23 = vsub.s32 1, %v1101_v18 }
  0x21   :  { %142 = vmatprep.subr.mxu0 %v78_v4  ;;  %v68_v15 = vld [vmem:[#allocation2 + $0x88] sm:$0xff]  ;;  %v67_v16 = vld [vmem:[#allocation2 + $0x80] sm:$0xff]  ;;  %v66_v17 = vld [vmem:[#allocation2 + $0x78] sm:$0xff] }
  0x22   :  { %143 = vmatpush1.msra.mxu0 %v77_v5  ;;  %v65_v19 = vld [vmem:[#allocation2 + $0x70] sm:$0xff]  ;;  %v64_v20 = vld [vmem:[#allocation2 + $0x68] sm:$0xff]  ;;  %v63_v21 = vld [vmem:[#allocation2 + $0x60] sm:$0xff] }
  0x23   :  { %144 = vmatprep.subr.mxu0 %v76_v6  ;;  %v62_v22 = vld [vmem:[#allocation2 + $0x58] sm:$0xff]  ;;  %v61_v24 = vld [vmem:[#allocation2 + $0x50] sm:$0xff]  ;;  %v60_v25 = vld [vmem:[#allocation2 + $0x48] sm:$0xff] }
  0x24   :  { %145 = vmatpush1.msra.mxu0 %v75_v7  ;;  %v59_v26 = vld [vmem:[#allocation2 + $0x40] sm:$0xff]  ;;  %v243_v28 = vld [vmem:[#allocation2 + $0x2f8] sm:$0xff]  ;;  %v242_v31 = vld [vmem:[#allocation2 + $0x2f0] sm:$0xff] }
  0x25   :  { %146 = vmatprep.subr.mxu0 %v74_v8  ;;  %v1109_v27 = vld [vmem:[%s1136_s0] sm:$0x3]  ;;  %v58_v29 = vld [vmem:[#allocation2 + $0x38] sm:$0xff]  ;;  %289 = vmatprep.subr.mxu1 %v243_v28  ;;  %v241_v32 = vld [vmem:[#allocation2 + $0x2e8] sm:$0xff] }
  0x26   :  { %147 = vmatpush1.msra.mxu0 %v73_v9  ;;  %v124_v30 = vrot.slane %v1109_v27, %v1104_v23  ;;  %v57_v33 = vld [vmem:[#allocation2 + $0x30] sm:$0xff]  ;;  %290 = vmatpush1.msra.mxu1 %v242_v31  ;;  %v240_v34 = vld [vmem:[#allocation2 + $0x2e0] sm:$0xff]  ;;  %v56_v35 = vld [vmem:[#allocation2 + $0x28] sm:$0xff] }
  0x27   :  { %148 = vmatprep.subr.mxu0 %v72_v10  ;;  %v239_v36 = vld [vmem:[#allocation2 + $0x2d8] sm:$0xff]  ;;  %v55_v37 = vld [vmem:[#allocation2 + $0x20] sm:$0xff]  ;;  %291 = vmatprep.subr.mxu1 %v241_v32  ;;  %v238_v38 = vld [vmem:[#allocation2 + $0x2d0] sm:$0xff] }
  0x28   :  { %149 = vmatpush1.msra.mxu0 %v71_v11  ;;  %202 = vmatprep.mubr.f32.mxu0 %v124_v30  ;;  %v54_v39 = vld [vmem:[#allocation2 + $0x18] sm:$0xff]  ;;  %v237_v40 = vld [vmem:[#allocation2 + $0x2c8] sm:$0xff]  ;;  %v53_v41 = vld [vmem:[#allocation2 + $0x10] sm:$0xff] }
  0x29   :  { %150 = vmatprep.subr.mxu0 %v70_v12  ;;  %292 = vmatpush1.msra.mxu1 %v240_v34  ;;  %v236_v42 = vld [vmem:[#allocation2 + $0x2c0] sm:$0xff]  ;;  %v52_v43 = vld [vmem:[#allocation2 + $0x8] sm:$0xff]  ;;  %v235_v44 = vld [vmem:[#allocation2 + $0x2b8] sm:$0xff] }
  0x2a   :  { %151 = vmatpush1.msra.mxu0 %v69_v14  ;;  %293 = vmatprep.subr.mxu1 %v239_v36  ;;  %v51_v45 = vld [vmem:[#allocation2] sm:$0xff]  ;;  %v234_v46 = vld [vmem:[#allocation2 + $0x2b0] sm:$0xff]  ;;  %v114_v47 = vld [vmem:[#allocation2 + $0x1f8] sm:$0xff] }
  0x2b   :  { %152 = vmatprep.subr.mxu0 %v68_v15  ;;  %294 = vmatpush1.msra.mxu1 %v238_v38  ;;  %v233_v48 = vld [vmem:[#allocation2 + $0x2a8] sm:$0xff]  ;;  %v113_v49 = vld [vmem:[#allocation2 + $0x1f0] sm:$0xff]  ;;  %v232_v50 = vld [vmem:[#allocation2 + $0x2a0] sm:$0xff] }
  0x2c   :  { %153 = vmatpush1.msra.mxu0 %v67_v16  ;;  %295 = vmatprep.subr.mxu1 %v237_v40  ;;  %v112_v51 = vld [vmem:[#allocation2 + $0x1e8] sm:$0xff]  ;;  %v231_v52 = vld [vmem:[#allocation2 + $0x298] sm:$0xff]  ;;  %v111_v53 = vld [vmem:[#allocation2 + $0x1e0] sm:$0xff] }
  0x2d   :  { %154 = vmatprep.subr.mxu0 %v66_v17  ;;  %296 = vmatpush1.msra.mxu1 %v236_v42  ;;  %v230_v54 = vld [vmem:[#allocation2 + $0x290] sm:$0xff]  ;;  %v110_v55 = vld [vmem:[#allocation2 + $0x1d8] sm:$0xff]  ;;  %v229_v56 = vld [vmem:[#allocation2 + $0x288] sm:$0xff] }
  0x2e   :  { %155 = vmatpush1.msra.mxu0 %v65_v19  ;;  %297 = vmatprep.subr.mxu1 %v235_v44  ;;  %v109_v57 = vld [vmem:[#allocation2 + $0x1d0] sm:$0xff]  ;;  %v228_v58 = vld [vmem:[#allocation2 + $0x280] sm:$0xff]  ;;  %v108_v59 = vld [vmem:[#allocation2 + $0x1c8] sm:$0xff] }
  0x2f   :  { %156 = vmatprep.subr.mxu0 %v64_v20  ;;  %298 = vmatpush1.msra.mxu1 %v234_v46  ;;  %v227_v60 = vld [vmem:[#allocation2 + $0x278] sm:$0xff]  ;;  %v107_v61 = vld [vmem:[#allocation2 + $0x1c0] sm:$0xff]  ;;  %v226_v62 = vld [vmem:[#allocation2 + $0x270] sm:$0xff] }
  0x30   :  { %157 = vmatpush1.msra.mxu0 %v63_v21  ;;  %299 = vmatprep.subr.mxu1 %v233_v48  ;;  %v106_v63 = vld [vmem:[#allocation2 + $0x1b8] sm:$0xff]  ;;  %v225_v0 = vld [vmem:[#allocation2 + $0x268] sm:$0xff]  ;;  %v105_v1 = vld [vmem:[#allocation2 + $0x1b0] sm:$0xff] }
  0x31   :  { %158 = vmatprep.subr.mxu0 %v62_v22  ;;  %300 = vmatpush1.msra.mxu1 %v232_v50  ;;  %v224_v2 = vld [vmem:[#allocation2 + $0x260] sm:$0xff]  ;;  %v104_v3 = vld [vmem:[#allocation2 + $0x1a8] sm:$0xff]  ;;  %v223_v4 = vld [vmem:[#allocation2 + $0x258] sm:$0xff] }
  0x32   :  { %159 = vmatpush1.msra.mxu0 %v61_v24  ;;  %301 = vmatprep.subr.mxu1 %v231_v52  ;;  %v103_v5 = vld [vmem:[#allocation2 + $0x1a0] sm:$0xff]  ;;  %v222_v6 = vld [vmem:[#allocation2 + $0x250] sm:$0xff]  ;;  %v102_v7 = vld [vmem:[#allocation2 + $0x198] sm:$0xff] }
  0x33   :  { %160 = vmatprep.subr.mxu0 %v60_v25  ;;  %302 = vmatpush1.msra.mxu1 %v230_v54  ;;  %v221_v8 = vld [vmem:[#allocation2 + $0x248] sm:$0xff]  ;;  %v101_v9 = vld [vmem:[#allocation2 + $0x190] sm:$0xff]  ;;  %v220_v10 = vld [vmem:[#allocation2 + $0x240] sm:$0xff] }
  0x34   :  { %161 = vmatpush1.msra.mxu0 %v59_v26  ;;  %303 = vmatprep.subr.mxu1 %v229_v56  ;;  %v100_v11 = vld [vmem:[#allocation2 + $0x188] sm:$0xff]  ;;  %v219_v12 = vld [vmem:[#allocation2 + $0x238] sm:$0xff]  ;;  %v99_v13 = vld [vmem:[#allocation2 + $0x180] sm:$0xff] }
  0x35   :  { %162 = vmatprep.subr.mxu0 %v58_v29  ;;  %304 = vmatpush1.msra.mxu1 %v228_v58  ;;  %v218_v14 = vld [vmem:[#allocation2 + $0x230] sm:$0xff]  ;;  %v98_v15 = vld [vmem:[#allocation2 + $0x178] sm:$0xff]  ;;  %v217_v16 = vld [vmem:[#allocation2 + $0x228] sm:$0xff] }
  0x36   :  { %163 = vmatpush1.msra.mxu0 %v57_v33  ;;  %305 = vmatprep.subr.mxu1 %v227_v60  ;;  %v97_v17 = vld [vmem:[#allocation2 + $0x170] sm:$0xff]  ;;  %v216_v19 = vld [vmem:[#allocation2 + $0x220] sm:$0xff]  ;;  %v96_v20 = vld [vmem:[#allocation2 + $0x168] sm:$0xff] }
  0x37   :  { %164 = vmatprep.subr.mxu0 %v56_v35  ;;  %306 = vmatpush1.msra.mxu1 %v226_v62  ;;  %v215_v21 = vld [vmem:[#allocation2 + $0x218] sm:$0xff]  ;;  %v95_v22 = vld [vmem:[#allocation2 + $0x160] sm:$0xff]  ;;  %v214_v24 = vld [vmem:[#allocation2 + $0x210] sm:$0xff] }
  0x38   :  { %165 = vmatpush1.msra.mxu0 %v55_v37  ;;  %307 = vmatprep.subr.mxu1 %v225_v0  ;;  %v94_v25 = vld [vmem:[#allocation2 + $0x158] sm:$0xff]  ;;  %v213_v26 = vld [vmem:[#allocation2 + $0x208] sm:$0xff]  ;;  %v93_v28 = vld [vmem:[#allocation2 + $0x150] sm:$0xff] }
  0x39   :  { %166 = vmatprep.subr.mxu0 %v54_v39  ;;  %308 = vmatpush1.msra.mxu1 %v224_v2  ;;  %v212_v29 = vld [vmem:[#allocation2 + $0x200] sm:$0xff]  ;;  %v92_v30 = vld [vmem:[#allocation2 + $0x148] sm:$0xff]  ;;  %v275_v31 = vld [vmem:[#allocation2 + $0x3f8] sm:$0xff] }
  0x3a   :  { %167 = vmatpush1.msra.mxu0 %v53_v41  ;;  %309 = vmatprep.subr.mxu1 %v223_v4  ;;  %v91_v32 = vld [vmem:[#allocation2 + $0x140] sm:$0xff]  ;;  %v274_v33 = vld [vmem:[#allocation2 + $0x3f0] sm:$0xff]  ;;  %v90_v34 = vld [vmem:[#allocation2 + $0x138] sm:$0xff]  ;;  %v1114_v41 = vsub.s32 0, %v1101_v18 }
  0x3b   :  { %168 = vmatprep.subr.mxu0 %v52_v43  ;;  %310 = vmatpush1.msra.mxu1 %v222_v6  ;;  %v273_v35 = vld [vmem:[#allocation2 + $0x3e8] sm:$0xff]  ;;  %v89_v36 = vld [vmem:[#allocation2 + $0x130] sm:$0xff]  ;;  %v272_v37 = vld [vmem:[#allocation2 + $0x3e0] sm:$0xff] }
  0x3c   :  { %169 = vmatpush1.msra.mxu0 %v51_v45  ;;  %311 = vmatprep.subr.mxu1 %v221_v8  ;;  %v88_v38 = vld [vmem:[#allocation2 + $0x128] sm:$0xff]  ;;  %v271_v39 = vld [vmem:[#allocation2 + $0x3d8] sm:$0xff]  ;;  %v87_v40 = vld [vmem:[#allocation2 + $0x120] sm:$0xff]  ;;  %v120_v18 = vrot.slane %v1109_v27, %v1114_v41 }
  0x3d   :  { %170 = vmatprep.subr.mxu0 %v114_v47  ;;  %312 = vmatpush1.msra.mxu1 %v220_v10  ;;  %v270_v42 = vld [vmem:[#allocation2 + $0x3d0] sm:$0xff]  ;;  %v86_v43 = vld [vmem:[#allocation2 + $0x118] sm:$0xff]  ;;  %v269_v44 = vld [vmem:[#allocation2 + $0x3c8] sm:$0xff] }
  0x3e   :  { %171 = vmatpush2.msra.mxu0 %v113_v49  ;;  %313 = vmatprep.subr.mxu1 %v219_v12  ;;  %v85_v45 = vld [vmem:[#allocation2 + $0x110] sm:$0xff]  ;;  %v268_v46 = vld [vmem:[#allocation2 + $0x3c0] sm:$0xff]  ;;  %v84_v47 = vld [vmem:[#allocation2 + $0x108] sm:$0xff] }
  0x3f   :  { %172 = vmatprep.subr.mxu0 %v112_v51  ;;  %314 = vmatpush1.msra.mxu1 %v218_v14  ;;  %v267_v48 = vld [vmem:[#allocation2 + $0x3b8] sm:$0xff]  ;;  %v83_v49 = vld [vmem:[#allocation2 + $0x100] sm:$0xff]  ;;  %v266_v50 = vld [vmem:[#allocation2 + $0x3b0] sm:$0xff] }
  0x40   :  { %173 = vmatpush2.msra.mxu0 %v111_v53  ;;  %315 = vmatprep.subr.mxu1 %v217_v16  ;;  %v265_v51 = vld [vmem:[#allocation2 + $0x3a8] sm:$0xff]  ;;  %v264_v52 = vld [vmem:[#allocation2 + $0x3a0] sm:$0xff]  ;;  %v263_v53 = vld [vmem:[#allocation2 + $0x398] sm:$0xff] }
  0x41   :  { %174 = vmatprep.subr.mxu0 %v110_v55  ;;  %316 = vmatpush1.msra.mxu1 %v216_v19  ;;  %v262_v54 = vld [vmem:[#allocation2 + $0x390] sm:$0xff]  ;;  %v261_v55 = vld [vmem:[#allocation2 + $0x388] sm:$0xff]  ;;  %v260_v56 = vld [vmem:[#allocation2 + $0x380] sm:$0xff] }
  0x42   :  { %175 = vmatpush2.msra.mxu0 %v109_v57  ;;  %317 = vmatprep.subr.mxu1 %v215_v21  ;;  %v259_v27 = vld [vmem:[#allocation2 + $0x378] sm:$0xff]  ;;  %v258_v57 = vld [vmem:[#allocation2 + $0x370] sm:$0xff]  ;;  %v257_v58 = vld [vmem:[#allocation2 + $0x368] sm:$0xff] }
  0x43   :  { %176 = vmatprep.subr.mxu0 %v108_v59  ;;  %318 = vmatpush1.msra.mxu1 %v214_v24  ;;  %v256_v59 = vld [vmem:[#allocation2 + $0x360] sm:$0xff]  ;;  %v255_v60 = vld [vmem:[#allocation2 + $0x358] sm:$0xff]  ;;  %v253_v62 = vld [vmem:[#allocation2 + $0x348] sm:$0xff] }
  0x44   :  { %177 = vmatpush2.msra.mxu0 %v107_v61  ;;  %319 = vmatprep.subr.mxu1 %v213_v26  ;;  %v254_v61 = vld [vmem:[#allocation2 + $0x350] sm:$0xff]  ;;  %v251_v0 = vld [vmem:[#allocation2 + $0x338] sm:$0xff]  ;;  %v249_v2 = vld [vmem:[#allocation2 + $0x328] sm:$0xff] }
  0x45   :  { %178 = vmatprep.subr.mxu0 %v106_v63  ;;  %320 = vmatpush1.msra.mxu1 %v212_v29  ;;  %v252_v63 = vld [vmem:[#allocation2 + $0x340] sm:$0xff]  ;;  %v247_v4 = vld [vmem:[#allocation2 + $0x318] sm:$0xff]  ;;  %v245_v6 = vld [vmem:[#allocation2 + $0x308] sm:$0xff] }
  0x46   :  { %179 = vmatpush2.msra.mxu0 %v105_v1  ;;  %321 = vmatprep.subr.mxu1 %v275_v31  ;;  %v250_v1 = vld [vmem:[#allocation2 + $0x330] sm:$0xff]  ;;  %v398_v8 = vld [vmem:[#allocation2 + $0x4f8] sm:$0xff]  ;;  %v396_v10 = vld [vmem:[#allocation2 + $0x4e8] sm:$0xff] }
  0x47   :  { %180 = vmatprep.subr.mxu0 %v104_v3  ;;  %322 = vmatpush2.msra.mxu1 %v274_v33  ;;  %v248_v3 = vld [vmem:[#allocation2 + $0x320] sm:$0xff]  ;;  %v394_v12 = vld [vmem:[#allocation2 + $0x4d8] sm:$0xff]  ;;  %v392_v14 = vld [vmem:[#allocation2 + $0x4c8] sm:$0xff] }
  0x48   :  { %181 = vmatpush2.msra.mxu0 %v103_v5  ;;  %323 = vmatprep.subr.mxu1 %v273_v35  ;;  %v246_v5 = vld [vmem:[#allocation2 + $0x310] sm:$0xff]  ;;  %v390_v16 = vld [vmem:[#allocation2 + $0x4b8] sm:$0xff]  ;;  %v388_v19 = vld [vmem:[#allocation2 + $0x4a8] sm:$0xff] }
  0x49   :  { %182 = vmatprep.subr.mxu0 %v102_v7  ;;  %324 = vmatpush2.msra.mxu1 %v272_v37  ;;  %v244_v7 = vld [vmem:[#allocation2 + $0x300] sm:$0xff]  ;;  %v386_v21 = vld [vmem:[#allocation2 + $0x498] sm:$0xff]  ;;  %v384_v24 = vld [vmem:[#allocation2 + $0x488] sm:$0xff] }
  0x4a   :  { %183 = vmatpush2.msra.mxu0 %v101_v9  ;;  %325 = vmatprep.subr.mxu1 %v271_v39  ;;  %v397_v9 = vld [vmem:[#allocation2 + $0x4f0] sm:$0xff]  ;;  %v382_v26 = vld [vmem:[#allocation2 + $0x478] sm:$0xff]  ;;  %v380_v29 = vld [vmem:[#allocation2 + $0x468] sm:$0xff] }
  0x4b   :  { %184 = vmatprep.subr.mxu0 %v100_v11  ;;  %326 = vmatpush2.msra.mxu1 %v270_v42  ;;  %v395_v11 = vld [vmem:[#allocation2 + $0x4e0] sm:$0xff]  ;;  %v378_v31 = vld [vmem:[#allocation2 + $0x458] sm:$0xff]  ;;  %v376_v33 = vld [vmem:[#allocation2 + $0x448] sm:$0xff] }
  0x4c   :  { %185 = vmatpush2.msra.mxu0 %v99_v13  ;;  %327 = vmatprep.subr.mxu1 %v269_v44  ;;  %v393_v13 = vld [vmem:[#allocation2 + $0x4d0] sm:$0xff]  ;;  %v374_v35 = vld [vmem:[#allocation2 + $0x438] sm:$0xff]  ;;  %v372_v37 = vld [vmem:[#allocation2 + $0x428] sm:$0xff] }
  0x4d   :  { %186 = vmatprep.subr.mxu0 %v98_v15  ;;  %328 = vmatpush2.msra.mxu1 %v268_v46  ;;  %v391_v15 = vld [vmem:[#allocation2 + $0x4c0] sm:$0xff]  ;;  %v370_v39 = vld [vmem:[#allocation2 + $0x418] sm:$0xff]  ;;  %v368_v42 = vld [vmem:[#allocation2 + $0x408] sm:$0xff] }
  0x4e   :  { %187 = vmatpush2.msra.mxu0 %v97_v17  ;;  %329 = vmatprep.subr.mxu1 %v267_v48  ;;  %v389_v17 = vld [vmem:[#allocation2 + $0x4b0] sm:$0xff]  ;;  %v430_v44 = vld [vmem:[#allocation2 + $0x5f8] sm:$0xff]  ;;  %v428_v46 = vld [vmem:[#allocation2 + $0x5e8] sm:$0xff] }
  0x4f   :  { %188 = vmatprep.subr.mxu0 %v96_v20  ;;  %330 = vmatpush2.msra.mxu1 %v266_v50  ;;  %v387_v20 = vld [vmem:[#allocation2 + $0x4a0] sm:$0xff]  ;;  %v426_v48 = vld [vmem:[#allocation2 + $0x5d8] sm:$0xff] }
  0x50   :  { %189 = vmatpush2.msra.mxu0 %v95_v22  ;;  %331 = vmatprep.subr.mxu1 %v265_v51  ;;  %v385_v22 = vld [vmem:[#allocation2 + $0x490] sm:$0xff]  ;;  %v423_v50 = vld [vmem:[#allocation2 + $0x5c0] sm:$0xff]  ;;  %v422_v51 = vld [vmem:[#allocation2 + $0x5b8] sm:$0xff] }
  0x51   :  { %190 = vmatprep.subr.mxu0 %v94_v25  ;;  %332 = vmatpush2.msra.mxu1 %v264_v52  ;;  %v383_v25 = vld [vmem:[#allocation2 + $0x480] sm:$0xff]  ;;  %v421_v52 = vld [vmem:[#allocation2 + $0x5b0] sm:$0xff] }
  0x52   :  { %191 = vmatpush2.msra.mxu0 %v93_v28  ;;  %333 = vmatprep.subr.mxu1 %v263_v53  ;;  %v381_v28 = vld [vmem:[#allocation2 + $0x470] sm:$0xff]  ;;  %v420_v53 = vld [vmem:[#allocation2 + $0x5a8] sm:$0xff] }
  0x53   :  { %192 = vmatprep.subr.mxu0 %v92_v30  ;;  %334 = vmatpush2.msra.mxu1 %v262_v54  ;;  %v379_v30 = vld [vmem:[#allocation2 + $0x460] sm:$0xff] }
  0x54   :  { %193 = vmatpush2.msra.mxu0 %v91_v32  ;;  %335 = vmatprep.subr.mxu1 %v261_v55  ;;  %v377_v32 = vld [vmem:[#allocation2 + $0x450] sm:$0xff]  ;;  %v419_v54 = vld [vmem:[#allocation2 + $0x5a0] sm:$0xff]  ;;  %v418_v55 = vld [vmem:[#allocation2 + $0x598] sm:$0xff] }
  0x55   :  { %194 = vmatprep.subr.mxu0 %v90_v34  ;;  %336 = vmatpush2.msra.mxu1 %v260_v56  ;;  %v375_v34 = vld [vmem:[#allocation2 + $0x440] sm:$0xff]  ;;  %v417_v56 = vld [vmem:[#allocation2 + $0x590] sm:$0xff] }
  0x56   :  { %195 = vmatpush2.msra.mxu0 %v89_v36  ;;  %337 = vmatprep.subr.mxu1 %v259_v27  ;;  %v373_v36 = vld [vmem:[#allocation2 + $0x430] sm:$0xff]  ;;  %v416_v27 = vld [vmem:[#allocation2 + $0x588] sm:$0xff] }
  0x57   :  { %196 = vmatprep.subr.mxu0 %v88_v38  ;;  %338 = vmatpush2.msra.mxu1 %v258_v57  ;;  %v371_v38 = vld [vmem:[#allocation2 + $0x420] sm:$0xff] }
  0x58   :  { %197 = vmatpush2.msra.mxu0 %v87_v40  ;;  %339 = vmatprep.subr.mxu1 %v257_v58  ;;  %v369_v40 = vld [vmem:[#allocation2 + $0x410] sm:$0xff]  ;;  %v115_v57 = vld [vmem:[#allocation4] sm:$0x3] }
  0x59   :  { %198 = vmatprep.subr.mxu0 %v86_v43  ;;  %340 = vmatpush2.msra.mxu1 %v256_v59  ;;  %v367_v43 = vld [vmem:[#allocation2 + $0x400] sm:$0xff]  ;;  %v131_v58 = vrot.slane %v115_v57, %v1114_v41  ;;  %v135_v59 = vrot.slane %v115_v57, %v1104_v23  ;;  %v581_v57 = vld [vmem:[#allocation2 + $0x7d8] sm:$0xff] }
  0x5a   :  { %199 = vmatpush2.msra.mxu0 %v85_v45  ;;  %341 = vmatprep.subr.mxu1 %v255_v60  ;;  %v429_v45 = vld [vmem:[#allocation2 + $0x5f0] sm:$0xff] }
  0x5b   :  { %200 = vmatprep.subr.mxu0 %v84_v47  ;;  %342 = vmatpush2.msra.mxu1 %v254_v61  ;;  %v427_v47 = vld [vmem:[#allocation2 + $0x5e0] sm:$0xff] }
  0x5c   :  { %201 = vmatpush2.msra.mxu0 %v83_v49  ;;  %343 = vmatprep.subr.mxu1 %v253_v62  ;;  %v425_v49 = vld [vmem:[#allocation2 + $0x5d0] sm:$0xff] }
  0x5d   :  { %203 = vmatmul.mubr.f32.vlgmr.msra.gmra.mxu0 %v120_v18  ;;  %344 = vmatpush2.msra.mxu1 %v252_v63  ;;  %v424_v18 = vld [vmem:[#allocation2 + $0x5c8] sm:$0xff] }
  0x5e   :  { %345 = vmatprep.subr.mxu1 %v251_v0  ;;  %444 = vmatprep.subr.mxu0 %v398_v8  ;;  %v409_v8 = vld [vmem:[#allocation2 + $0x550] sm:$0xff] }
  0x5f   :  { %346 = vmatpush2.msra.mxu1 %v250_v1  ;;  %445 = vmatpush1.msra.mxu0 %v397_v9  ;;  %v408_v9 = vld [vmem:[#allocation2 + $0x548] sm:$0xff] }
  0x60   :  { %347 = vmatprep.subr.mxu1 %v249_v2  ;;  %446 = vmatprep.subr.mxu0 %v396_v10  ;;  %v415_v2 = vld [vmem:[#allocation2 + $0x580] sm:$0xff] }
  0x61   :  { %348 = vmatpush2.msra.mxu1 %v248_v3  ;;  %447 = vmatpush1.msra.mxu0 %v395_v11  ;;  %v414_v3 = vld [vmem:[#allocation2 + $0x578] sm:$0xff]  ;;  %v407_v10 = vld [vmem:[#allocation2 + $0x540] sm:$0xff] }
  0x62   :  { %349 = vmatprep.subr.mxu1 %v247_v4  ;;  %448 = vmatprep.subr.mxu0 %v394_v12  ;;  %v413_v4 = vld [vmem:[#allocation2 + $0x570] sm:$0xff]  ;;  %v406_v11 = vld [vmem:[#allocation2 + $0x538] sm:$0xff] }
  0x63   :  { %350 = vmatpush2.msra.mxu1 %v246_v5  ;;  %449 = vmatpush1.msra.mxu0 %v393_v13  ;;  %v412_v5 = vld [vmem:[#allocation2 + $0x568] sm:$0xff]  ;;  %v405_v12 = vld [vmem:[#allocation2 + $0x530] sm:$0xff] }
  0x64   :  { %351 = vmatprep.subr.mxu1 %v245_v6  ;;  %450 = vmatprep.subr.mxu0 %v392_v14  ;;  %v411_v6 = vld [vmem:[#allocation2 + $0x560] sm:$0xff]  ;;  %v404_v13 = vld [vmem:[#allocation2 + $0x528] sm:$0xff] }
  0x65   :  { %352 = vmatpush2.msra.mxu1 %v244_v7  ;;  %451 = vmatpush1.msra.mxu0 %v391_v15  ;;  %v410_v7 = vld [vmem:[#allocation2 + $0x558] sm:$0xff]  ;;  %v403_v14 = vld [vmem:[#allocation2 + $0x520] sm:$0xff] }
  0x66   :  { %452 = vmatprep.subr.mxu0 %v390_v16  ;;  %v402_v15 = vld [vmem:[#allocation2 + $0x518] sm:$0xff]  ;;  %v401_v16 = vld [vmem:[#allocation2 + $0x510] sm:$0xff] }
  0x67   :  { %453 = vmatpush1.msra.mxu0 %v389_v17  ;;  %v400_v17 = vld [vmem:[#allocation2 + $0x508] sm:$0xff] }
  0x68   :  { %454 = vmatprep.subr.mxu0 %v388_v19  ;;  %v399_v19 = vld [vmem:[#allocation2 + $0x500] sm:$0xff] }
  0x69   :  { %455 = vmatpush1.msra.mxu0 %v387_v20  ;;  %v553_v20 = vld [vmem:[#allocation2 + $0x6f8] sm:$0xff] }
  0x6a   :  { %456 = vmatprep.subr.mxu0 %v386_v21  ;;  %v552_v21 = vld [vmem:[#allocation2 + $0x6f0] sm:$0xff]  ;;  %599 = vmatprep.subr.mxu1 %v553_v20 }
  0x6b   :  { %457 = vmatpush1.msra.mxu0 %v385_v22  ;;  %v551_v22 = vld [vmem:[#allocation2 + $0x6e8] sm:$0xff]  ;;  %v564_v20 = vld [vmem:[#allocation2 + $0x750] sm:$0xff] }
  0x6c   :  { %458 = vmatprep.subr.mxu0 %v384_v24  ;;  %v550_v24 = vld [vmem:[#allocation2 + $0x6e0] sm:$0xff] }
  0x6d   :  { %459 = vmatpush1.msra.mxu0 %v383_v25  ;;  %v549_v25 = vld [vmem:[#allocation2 + $0x6d8] sm:$0xff] }
  0x6e   :  { %460 = vmatprep.subr.mxu0 %v382_v26  ;;  %v548_v26 = vld [vmem:[#allocation2 + $0x6d0] sm:$0xff] }
  0x6f   :  { %461 = vmatpush1.msra.mxu0 %v381_v28  ;;  %v547_v28 = vld [vmem:[#allocation2 + $0x6c8] sm:$0xff] }
  0x70   :  { %462 = vmatprep.subr.mxu0 %v380_v29  ;;  %v546_v29 = vld [vmem:[#allocation2 + $0x6c0] sm:$0xff] }
  0x71   :  { %463 = vmatpush1.msra.mxu0 %v379_v30  ;;  %v545_v30 = vld [vmem:[#allocation2 + $0x6b8] sm:$0xff] }
  0x72   :  { %464 = vmatprep.subr.mxu0 %v378_v31  ;;  %v544_v31 = vld [vmem:[#allocation2 + $0x6b0] sm:$0xff] }
  0x73   :  { %465 = vmatpush1.msra.mxu0 %v377_v32  ;;  %v543_v32 = vld [vmem:[#allocation2 + $0x6a8] sm:$0xff] }
  0x74   :  { %466 = vmatprep.subr.mxu0 %v376_v33  ;;  %v542_v33 = vld [vmem:[#allocation2 + $0x6a0] sm:$0xff] }
  0x75   :  { %467 = vmatpush1.msra.mxu0 %v375_v34  ;;  %v541_v34 = vld [vmem:[#allocation2 + $0x698] sm:$0xff] }
  0x76   :  { %468 = vmatprep.subr.mxu0 %v374_v35  ;;  %v540_v35 = vld [vmem:[#allocation2 + $0x690] sm:$0xff] }
  0x77   :  { %469 = vmatpush1.msra.mxu0 %v373_v36  ;;  %v539_v36 = vld [vmem:[#allocation2 + $0x688] sm:$0xff] }
  0x78   :  { %470 = vmatprep.subr.mxu0 %v372_v37  ;;  %v538_v37 = vld [vmem:[#allocation2 + $0x680] sm:$0xff] }
  0x79   :  { %471 = vmatpush1.msra.mxu0 %v371_v38  ;;  %v537_v38 = vld [vmem:[#allocation2 + $0x678] sm:$0xff] }
  0x7a   :  { %472 = vmatprep.subr.mxu0 %v370_v39  ;;  %v536_v39 = vld [vmem:[#allocation2 + $0x670] sm:$0xff] }
  0x7b   :  { %473 = vmatpush1.msra.mxu0 %v369_v40  ;;  %v535_v40 = vld [vmem:[#allocation2 + $0x668] sm:$0xff] }
  0x7c   :  { %474 = vmatprep.subr.mxu0 %v368_v42  ;;  %v534_v42 = vld [vmem:[#allocation2 + $0x660] sm:$0xff] }
  0x7d   :  { %475 = vmatpush1.msra.mxu0 %v367_v43  ;;  %v533_v43 = vld [vmem:[#allocation2 + $0x658] sm:$0xff] }
  0x7e   :  { %476 = vmatprep.subr.mxu0 %v430_v44  ;;  %v532_v44 = vld [vmem:[#allocation2 + $0x650] sm:$0xff] }
  0x7f   :  { %477 = vmatpush2.msra.mxu0 %v429_v45  ;;  %v531_v45 = vld [vmem:[#allocation2 + $0x648] sm:$0xff] }
  0x80   :  { %478 = vmatprep.subr.mxu0 %v428_v46  ;;  %v530_v46 = vld [vmem:[#allocation2 + $0x640] sm:$0xff] }
  0x81   :  { %479 = vmatpush2.msra.mxu0 %v427_v47  ;;  %v529_v47 = vld [vmem:[#allocation2 + $0x638] sm:$0xff] }
  0x82   :  { %480 = vmatprep.subr.mxu0 %v426_v48  ;;  %v528_v48 = vld [vmem:[#allocation2 + $0x630] sm:$0xff] }
  0x83   :  { %481 = vmatpush2.msra.mxu0 %v425_v49  ;;  %v527_v49 = vld [vmem:[#allocation2 + $0x628] sm:$0xff] }
  0x84   :  { %482 = vmatprep.subr.mxu0 %v424_v18  ;;  %v526_v18 = vld [vmem:[#allocation2 + $0x620] sm:$0xff] }
  0x85   :  { %483 = vmatpush2.msra.mxu0 %v423_v50  ;;  %v525_v50 = vld [vmem:[#allocation2 + $0x618] sm:$0xff] }
  0x86   :  { %484 = vmatprep.subr.mxu0 %v422_v51  ;;  %v524_v51 = vld [vmem:[#allocation2 + $0x610] sm:$0xff] }
  0x87   :  { %485 = vmatpush2.msra.mxu0 %v421_v52  ;;  %v523_v52 = vld [vmem:[#allocation2 + $0x608] sm:$0xff] }
  0x88   :  { %486 = vmatprep.subr.mxu0 %v420_v53  ;;  %v522_v53 = vld [vmem:[#allocation2 + $0x600] sm:$0xff] }
  0x89   :  { %487 = vmatpush2.msra.mxu0 %v419_v54  ;;  %v585_v54 = vld [vmem:[#allocation2 + $0x7f8] sm:$0xff] }
  0x8a   :  { %488 = vmatprep.subr.mxu0 %v418_v55  ;;  %v584_v55 = vld [vmem:[#allocation2 + $0x7f0] sm:$0xff] }
  0x8b   :  { %489 = vmatpush2.msra.mxu0 %v417_v56  ;;  %v583_v56 = vld [vmem:[#allocation2 + $0x7e8] sm:$0xff] }
  0x8c   :  { %490 = vmatprep.subr.mxu0 %v416_v27  ;;  %v582_v27 = vld [vmem:[#allocation2 + $0x7e0] sm:$0xff] }
  0x8d   :  { %491 = vmatpush2.msra.mxu0 %v415_v2  ;;  %v572_v2 = vld [vmem:[#allocation2 + $0x790] sm:$0xff] }
  0x8e   :  { %492 = vmatprep.subr.mxu0 %v414_v3  ;;  %v571_v3 = vld [vmem:[#allocation2 + $0x788] sm:$0xff] }
  0x8f   :  { %493 = vmatpush2.msra.mxu0 %v413_v4  ;;  %v277_v4 = vld [vmem:[#allocation4 + $0x2] sm:$0x3] }
  0x90   :  { %494 = vmatprep.subr.mxu0 %v412_v5  ;;  %v282_v5 = vrot.slane %v277_v4, %v1114_v41 }
  0x91   :  { %495 = vmatpush2.msra.mxu0 %v411_v6  ;;  %v286_v6 = vrot.slane %v277_v4, %v1104_v23  ;;  %v736_v4 = vld [vmem:[#allocation2 + $0x9d8] sm:$0xff] }
  0x92   :  { %496 = vmatprep.subr.mxu0 %v410_v7 }
  0x93   :  { %497 = vmatpush2.msra.mxu0 %v409_v8 }
  0x94   :  { %498 = vmatprep.subr.mxu0 %v408_v9 }
  0x95   :  { %499 = vmatpush2.msra.mxu0 %v407_v10 }
  0x96   :  { %500 = vmatprep.subr.mxu0 %v406_v11 }
  0x97   :  { %501 = vmatpush2.msra.mxu0 %v405_v12 }
  0x98   :  { %502 = vmatprep.subr.mxu0 %v404_v13  ;;  %v570_v13 = vld [vmem:[#allocation2 + $0x780] sm:$0xff] }
  0x99   :  { %503 = vmatpush2.msra.mxu0 %v403_v14  ;;  %v569_v14 = vld [vmem:[#allocation2 + $0x778] sm:$0xff] }
  0x9a   :  { %504 = vmatprep.subr.mxu0 %v402_v15  ;;  %v568_v15 = vld [vmem:[#allocation2 + $0x770] sm:$0xff] }
  0x9b   :  { %505 = vmatpush2.msra.mxu0 %v401_v16  ;;  %v567_v16 = vld [vmem:[#allocation2 + $0x768] sm:$0xff] }
  0x9c   :  { %506 = vmatprep.subr.mxu0 %v400_v17  ;;  %v566_v17 = vld [vmem:[#allocation2 + $0x760] sm:$0xff] }
  0x9d   :  { %507 = vmatpush2.msra.mxu0 %v399_v19  ;;  %v565_v19 = vld [vmem:[#allocation2 + $0x758] sm:$0xff] }
 0x11d   :  { %v204_v60 = vpop.f32.mrf.mxu0 }
 0x11e   :  { %v205_v61 = vadd.f32 %v204_v60, %v131_v58  ;;  %v580_v58 = vld [vmem:[#allocation2 + $0x7d0] sm:$0xff]  ;;  %v578_v60 = vld [vmem:[#allocation2 + $0x7c0] sm:$0xff] }
 0x11f   :  { %v206_v62 = vpop.f32.mrf.mxu0 }
 0x120   :  { %v207_v63 = vadd.f32 %v206_v62, %v135_v59  ;;  %v209_v1 = vmax.f32 %v205_v61, 0.0  ;;  %v579_v59 = vld [vmem:[#allocation2 + $0x7c8] sm:$0xff]  ;;  %v577_v61 = vld [vmem:[#allocation2 + $0x7b8] sm:$0xff]  ;;  %v576_v62 = vld [vmem:[#allocation2 + $0x7b0] sm:$0xff] }
 0x122   :  { %v210_v0 = vmax.f32 %v207_v63, 0.0  ;;  %v575_v63 = vld [vmem:[#allocation2 + $0x7a8] sm:$0xff] }
 0x124   :  { %353 = vmatprep.mubr.f32.mxu1 %v210_v0  ;;  %v574_v0 = vld [vmem:[#allocation2 + $0x7a0] sm:$0xff] }
 0x125   :  { %354 = vmatmul.mubr.f32.vlgmr.msra.gmra.mxu1 %v209_v1  ;;  %v573_v1 = vld [vmem:[#allocation2 + $0x798] sm:$0xff] }
 0x126   :  { %600 = vmatpush1.msra.mxu1 %v552_v21  ;;  %v563_v21 = vld [vmem:[#allocation2 + $0x748] sm:$0xff] }
 0x127   :  { %601 = vmatprep.subr.mxu1 %v551_v22  ;;  %v562_v22 = vld [vmem:[#allocation2 + $0x740] sm:$0xff] }
 0x128   :  { %602 = vmatpush1.msra.mxu1 %v550_v24  ;;  %v561_v24 = vld [vmem:[#allocation2 + $0x738] sm:$0xff] }
 0x129   :  { %603 = vmatprep.subr.mxu1 %v549_v25  ;;  %v560_v25 = vld [vmem:[#allocation2 + $0x730] sm:$0xff] }
 0x12a   :  { %604 = vmatpush1.msra.mxu1 %v548_v26  ;;  %v559_v26 = vld [vmem:[#allocation2 + $0x728] sm:$0xff] }
 0x12b   :  { %605 = vmatprep.subr.mxu1 %v547_v28  ;;  %v558_v28 = vld [vmem:[#allocation2 + $0x720] sm:$0xff] }
 0x12c   :  { %606 = vmatpush1.msra.mxu1 %v546_v29  ;;  %v557_v29 = vld [vmem:[#allocation2 + $0x718] sm:$0xff] }
 0x12d   :  { %607 = vmatprep.subr.mxu1 %v545_v30  ;;  %v556_v30 = vld [vmem:[#allocation2 + $0x710] sm:$0xff] }
 0x12e   :  { %608 = vmatpush1.msra.mxu1 %v544_v31  ;;  %v555_v31 = vld [vmem:[#allocation2 + $0x708] sm:$0xff] }
 0x12f   :  { %609 = vmatprep.subr.mxu1 %v543_v32  ;;  %v554_v32 = vld [vmem:[#allocation2 + $0x700] sm:$0xff] }
 0x130   :  { %610 = vmatpush1.msra.mxu1 %v542_v33  ;;  %v708_v33 = vld [vmem:[#allocation2 + $0x8f8] sm:$0xff] }
 0x131   :  { %611 = vmatprep.subr.mxu1 %v541_v34  ;;  %v707_v34 = vld [vmem:[#allocation2 + $0x8f0] sm:$0xff]  ;;  %754 = vmatprep.subr.mxu0 %v708_v33 }
 0x132   :  { %612 = vmatpush1.msra.mxu1 %v540_v35  ;;  %v706_v35 = vld [vmem:[#allocation2 + $0x8e8] sm:$0xff]  ;;  %v719_v33 = vld [vmem:[#allocation2 + $0x950] sm:$0xff] }
 0x133   :  { %613 = vmatprep.subr.mxu1 %v539_v36  ;;  %v705_v36 = vld [vmem:[#allocation2 + $0x8e0] sm:$0xff] }
 0x134   :  { %614 = vmatpush1.msra.mxu1 %v538_v37  ;;  %v704_v37 = vld [vmem:[#allocation2 + $0x8d8] sm:$0xff] }
 0x135   :  { %615 = vmatprep.subr.mxu1 %v537_v38  ;;  %v703_v38 = vld [vmem:[#allocation2 + $0x8d0] sm:$0xff] }
 0x136   :  { %616 = vmatpush1.msra.mxu1 %v536_v39  ;;  %v702_v39 = vld [vmem:[#allocation2 + $0x8c8] sm:$0xff] }
 0x137   :  { %617 = vmatprep.subr.mxu1 %v535_v40  ;;  %v701_v40 = vld [vmem:[#allocation2 + $0x8c0] sm:$0xff] }
 0x138   :  { %618 = vmatpush1.msra.mxu1 %v534_v42  ;;  %v700_v42 = vld [vmem:[#allocation2 + $0x8b8] sm:$0xff] }
 0x139   :  { %619 = vmatprep.subr.mxu1 %v533_v43  ;;  %v699_v43 = vld [vmem:[#allocation2 + $0x8b0] sm:$0xff] }
 0x13a   :  { %620 = vmatpush1.msra.mxu1 %v532_v44  ;;  %v698_v44 = vld [vmem:[#allocation2 + $0x8a8] sm:$0xff] }
 0x13b   :  { %621 = vmatprep.subr.mxu1 %v531_v45  ;;  %v697_v45 = vld [vmem:[#allocation2 + $0x8a0] sm:$0xff] }
 0x13c   :  { %622 = vmatpush1.msra.mxu1 %v530_v46  ;;  %v696_v46 = vld [vmem:[#allocation2 + $0x898] sm:$0xff] }
 0x13d   :  { %623 = vmatprep.subr.mxu1 %v529_v47  ;;  %v695_v47 = vld [vmem:[#allocation2 + $0x890] sm:$0xff] }
 0x13e   :  { %624 = vmatpush1.msra.mxu1 %v528_v48  ;;  %v694_v48 = vld [vmem:[#allocation2 + $0x888] sm:$0xff] }
 0x13f   :  { %625 = vmatprep.subr.mxu1 %v527_v49  ;;  %v693_v49 = vld [vmem:[#allocation2 + $0x880] sm:$0xff] }
 0x140   :  { %626 = vmatpush1.msra.mxu1 %v526_v18  ;;  %v692_v18 = vld [vmem:[#allocation2 + $0x878] sm:$0xff] }
 0x141   :  { %627 = vmatprep.subr.mxu1 %v525_v50  ;;  %v691_v50 = vld [vmem:[#allocation2 + $0x870] sm:$0xff] }
 0x142   :  { %628 = vmatpush1.msra.mxu1 %v524_v51  ;;  %v690_v51 = vld [vmem:[#allocation2 + $0x868] sm:$0xff] }
 0x143   :  { %629 = vmatprep.subr.mxu1 %v523_v52  ;;  %v689_v52 = vld [vmem:[#allocation2 + $0x860] sm:$0xff] }
 0x144   :  { %630 = vmatpush1.msra.mxu1 %v522_v53  ;;  %v688_v53 = vld [vmem:[#allocation2 + $0x858] sm:$0xff] }
 0x145   :  { %631 = vmatprep.subr.mxu1 %v585_v54  ;;  %v687_v54 = vld [vmem:[#allocation2 + $0x850] sm:$0xff] }
 0x146   :  { %632 = vmatpush2.msra.mxu1 %v584_v55  ;;  %v686_v55 = vld [vmem:[#allocation2 + $0x848] sm:$0xff] }
 0x147   :  { %633 = vmatprep.subr.mxu1 %v583_v56  ;;  %v685_v56 = vld [vmem:[#allocation2 + $0x840] sm:$0xff] }
 0x148   :  { %634 = vmatpush2.msra.mxu1 %v582_v27  ;;  %v684_v27 = vld [vmem:[#allocation2 + $0x838] sm:$0xff] }
 0x149   :  { %635 = vmatprep.subr.mxu1 %v581_v57  ;;  %v683_v57 = vld [vmem:[#allocation2 + $0x830] sm:$0xff] }
 0x14a   :  { %636 = vmatpush2.msra.mxu1 %v580_v58  ;;  %v682_v58 = vld [vmem:[#allocation2 + $0x828] sm:$0xff] }
 0x14b   :  { %637 = vmatprep.subr.mxu1 %v579_v59  ;;  %v681_v59 = vld [vmem:[#allocation2 + $0x820] sm:$0xff] }
 0x14c   :  { %638 = vmatpush2.msra.mxu1 %v578_v60  ;;  %v680_v60 = vld [vmem:[#allocation2 + $0x818] sm:$0xff] }
 0x14d   :  { %639 = vmatprep.subr.mxu1 %v577_v61  ;;  %v679_v61 = vld [vmem:[#allocation2 + $0x810] sm:$0xff] }
 0x14e   :  { %640 = vmatpush2.msra.mxu1 %v576_v62  ;;  %v678_v62 = vld [vmem:[#allocation2 + $0x808] sm:$0xff] }
 0x14f   :  { %641 = vmatprep.subr.mxu1 %v575_v63  ;;  %v677_v63 = vld [vmem:[#allocation2 + $0x800] sm:$0xff] }
 0x150   :  { %642 = vmatpush2.msra.mxu1 %v574_v0  ;;  %v740_v0 = vld [vmem:[#allocation2 + $0x9f8] sm:$0xff] }
 0x151   :  { %643 = vmatprep.subr.mxu1 %v573_v1  ;;  %v739_v1 = vld [vmem:[#allocation2 + $0x9f0] sm:$0xff] }
 0x152   :  { %644 = vmatpush2.msra.mxu1 %v572_v2  ;;  %v738_v2 = vld [vmem:[#allocation2 + $0x9e8] sm:$0xff] }
 0x153   :  { %645 = vmatprep.subr.mxu1 %v571_v3  ;;  %v737_v3 = vld [vmem:[#allocation2 + $0x9e0] sm:$0xff] }
 0x154   :  { %646 = vmatpush2.msra.mxu1 %v570_v13  ;;  %v727_v13 = vld [vmem:[#allocation2 + $0x990] sm:$0xff] }
 0x155   :  { %647 = vmatprep.subr.mxu1 %v569_v14  ;;  %v726_v14 = vld [vmem:[#allocation2 + $0x988] sm:$0xff] }
 0x156   :  { %648 = vmatpush2.msra.mxu1 %v568_v15  ;;  %v432_v15 = vld [vmem:[#allocation4 + $0x4] sm:$0x3] }
 0x157   :  { %649 = vmatprep.subr.mxu1 %v567_v16  ;;  %v437_v16 = vrot.slane %v432_v15, %v1114_v41 }
 0x158   :  { %650 = vmatpush2.msra.mxu1 %v566_v17  ;;  %v441_v17 = vrot.slane %v432_v15, %v1104_v23  ;;  %v891_v15 = vld [vmem:[#allocation2 + $0xbd8] sm:$0xff] }
 0x159   :  { %651 = vmatprep.subr.mxu1 %v565_v19 }
 0x15a   :  { %652 = vmatpush2.msra.mxu1 %v564_v20 }
 0x15b   :  { %653 = vmatprep.subr.mxu1 %v563_v21 }
 0x15c   :  { %654 = vmatpush2.msra.mxu1 %v562_v22 }
 0x15d   :  { %655 = vmatprep.subr.mxu1 %v561_v24 }
 0x15e   :  { %656 = vmatpush2.msra.mxu1 %v560_v25 }
 0x15f   :  { %657 = vmatprep.subr.mxu1 %v559_v26  ;;  %v725_v26 = vld [vmem:[#allocation2 + $0x980] sm:$0xff] }
 0x160   :  { %658 = vmatpush2.msra.mxu1 %v558_v28  ;;  %v724_v28 = vld [vmem:[#allocation2 + $0x978] sm:$0xff] }
 0x161   :  { %659 = vmatprep.subr.mxu1 %v557_v29  ;;  %v723_v29 = vld [vmem:[#allocation2 + $0x970] sm:$0xff] }
 0x162   :  { %660 = vmatpush2.msra.mxu1 %v556_v30  ;;  %v722_v30 = vld [vmem:[#allocation2 + $0x968] sm:$0xff] }
 0x163   :  { %661 = vmatprep.subr.mxu1 %v555_v31  ;;  %v721_v31 = vld [vmem:[#allocation2 + $0x960] sm:$0xff] }
 0x164   :  { %662 = vmatpush2.msra.mxu1 %v554_v32  ;;  %v720_v32 = vld [vmem:[#allocation2 + $0x958] sm:$0xff] }
 0x1e5   :  { %v355_v7 = vpop.f32.mrf.mxu1 }
 0x1e6   :  { %v356_v8 = vadd.f32 %v355_v7, %v282_v5  ;;  %v735_v5 = vld [vmem:[#allocation2 + $0x9d0] sm:$0xff]  ;;  %v733_v7 = vld [vmem:[#allocation2 + $0x9c0] sm:$0xff] }
 0x1e7   :  { %v357_v9 = vpop.f32.mrf.mxu1 }
 0x1e8   :  { %1010 = vtanh.f32 %v356_v8  ;;  %v358_v10 = vadd.f32 %v357_v9, %v286_v6  ;;  %v734_v6 = vld [vmem:[#allocation2 + $0x9c8] sm:$0xff]  ;;  %v732_v8 = vld [vmem:[#allocation2 + $0x9b8] sm:$0xff]  ;;  %v731_v9 = vld [vmem:[#allocation2 + $0x9b0] sm:$0xff] }
 0x1ea   :  { %v363_v11 = vmax.f32 %v358_v10, 0.0  ;;  %v730_v10 = vld [vmem:[#allocation2 + $0x9a8] sm:$0xff] }
 0x1ec   :  { %508 = vmatprep.mubr.f32.mxu0 %v363_v11  ;;  %v729_v11 = vld [vmem:[#allocation2 + $0x9a0] sm:$0xff] }
 0x1f5   :  { %v1011_v12 = vpop.eup %1010 }
 0x1f6   :  { %509 = vmatmul.mubr.f32.vlgmr.msra.gmra.mxu0 %v1011_v12  ;;  %v728_v12 = vld [vmem:[#allocation2 + $0x998] sm:$0xff] }
 0x1f7   :  { %755 = vmatpush1.msra.mxu0 %v707_v34  ;;  %v718_v34 = vld [vmem:[#allocation2 + $0x948] sm:$0xff] }
 0x1f8   :  { %756 = vmatprep.subr.mxu0 %v706_v35  ;;  %v717_v35 = vld [vmem:[#allocation2 + $0x940] sm:$0xff] }
 0x1f9   :  { %757 = vmatpush1.msra.mxu0 %v705_v36  ;;  %v716_v36 = vld [vmem:[#allocation2 + $0x938] sm:$0xff] }
 0x1fa   :  { %758 = vmatprep.subr.mxu0 %v704_v37  ;;  %v715_v37 = vld [vmem:[#allocation2 + $0x930] sm:$0xff] }
 0x1fb   :  { %759 = vmatpush1.msra.mxu0 %v703_v38  ;;  %v714_v38 = vld [vmem:[#allocation2 + $0x928] sm:$0xff] }
 0x1fc   :  { %760 = vmatprep.subr.mxu0 %v702_v39  ;;  %v713_v39 = vld [vmem:[#allocation2 + $0x920] sm:$0xff] }
 0x1fd   :  { %761 = vmatpush1.msra.mxu0 %v701_v40  ;;  %v712_v40 = vld [vmem:[#allocation2 + $0x918] sm:$0xff] }
 0x1fe   :  { %762 = vmatprep.subr.mxu0 %v700_v42  ;;  %v711_v42 = vld [vmem:[#allocation2 + $0x910] sm:$0xff] }
 0x1ff   :  { %763 = vmatpush1.msra.mxu0 %v699_v43  ;;  %v710_v43 = vld [vmem:[#allocation2 + $0x908] sm:$0xff] }
 0x200   :  { %764 = vmatprep.subr.mxu0 %v698_v44  ;;  %v709_v44 = vld [vmem:[#allocation2 + $0x900] sm:$0xff] }
 0x201   :  { %765 = vmatpush1.msra.mxu0 %v697_v45  ;;  %v863_v45 = vld [vmem:[#allocation2 + $0xaf8] sm:$0xff] }
 0x202   :  { %766 = vmatprep.subr.mxu0 %v696_v46  ;;  %v862_v46 = vld [vmem:[#allocation2 + $0xaf0] sm:$0xff]  ;;  %909 = vmatprep.subr.mxu1 %v863_v45 }
 0x203   :  { %767 = vmatpush1.msra.mxu0 %v695_v47  ;;  %v861_v47 = vld [vmem:[#allocation2 + $0xae8] sm:$0xff]  ;;  %v874_v45 = vld [vmem:[#allocation2 + $0xb50] sm:$0xff] }
 0x204   :  { %768 = vmatprep.subr.mxu0 %v694_v48  ;;  %v860_v48 = vld [vmem:[#allocation2 + $0xae0] sm:$0xff] }
 0x205   :  { %769 = vmatpush1.msra.mxu0 %v693_v49  ;;  %v859_v49 = vld [vmem:[#allocation2 + $0xad8] sm:$0xff] }
 0x206   :  { %770 = vmatprep.subr.mxu0 %v692_v18  ;;  %v858_v18 = vld [vmem:[#allocation2 + $0xad0] sm:$0xff] }
 0x207   :  { %771 = vmatpush1.msra.mxu0 %v691_v50  ;;  %v857_v50 = vld [vmem:[#allocation2 + $0xac8] sm:$0xff] }
 0x208   :  { %772 = vmatprep.subr.mxu0 %v690_v51  ;;  %v856_v51 = vld [vmem:[#allocation2 + $0xac0] sm:$0xff] }
 0x209   :  { %773 = vmatpush1.msra.mxu0 %v689_v52  ;;  %v855_v52 = vld [vmem:[#allocation2 + $0xab8] sm:$0xff] }
 0x20a   :  { %774 = vmatprep.subr.mxu0 %v688_v53  ;;  %v854_v53 = vld [vmem:[#allocation2 + $0xab0] sm:$0xff] }
 0x20b   :  { %775 = vmatpush1.msra.mxu0 %v687_v54  ;;  %v853_v54 = vld [vmem:[#allocation2 + $0xaa8] sm:$0xff] }
 0x20c   :  { %776 = vmatprep.subr.mxu0 %v686_v55  ;;  %v852_v55 = vld [vmem:[#allocation2 + $0xaa0] sm:$0xff] }
 0x20d   :  { %777 = vmatpush1.msra.mxu0 %v685_v56  ;;  %v851_v56 = vld [vmem:[#allocation2 + $0xa98] sm:$0xff] }
 0x20e   :  { %778 = vmatprep.subr.mxu0 %v684_v27  ;;  %v850_v27 = vld [vmem:[#allocation2 + $0xa90] sm:$0xff] }
 0x20f   :  { %779 = vmatpush1.msra.mxu0 %v683_v57  ;;  %v849_v57 = vld [vmem:[#allocation2 + $0xa88] sm:$0xff] }
 0x210   :  { %780 = vmatprep.subr.mxu0 %v682_v58  ;;  %v848_v58 = vld [vmem:[#allocation2 + $0xa80] sm:$0xff] }
 0x211   :  { %781 = vmatpush1.msra.mxu0 %v681_v59  ;;  %v847_v59 = vld [vmem:[#allocation2 + $0xa78] sm:$0xff] }
 0x212   :  { %782 = vmatprep.subr.mxu0 %v680_v60  ;;  %v846_v60 = vld [vmem:[#allocation2 + $0xa70] sm:$0xff] }
 0x213   :  { %783 = vmatpush1.msra.mxu0 %v679_v61  ;;  %v845_v61 = vld [vmem:[#allocation2 + $0xa68] sm:$0xff] }
 0x214   :  { %784 = vmatprep.subr.mxu0 %v678_v62  ;;  %v844_v62 = vld [vmem:[#allocation2 + $0xa60] sm:$0xff] }
 0x215   :  { %785 = vmatpush1.msra.mxu0 %v677_v63  ;;  %v843_v63 = vld [vmem:[#allocation2 + $0xa58] sm:$0xff] }
 0x216   :  { %786 = vmatprep.subr.mxu0 %v740_v0  ;;  %v842_v0 = vld [vmem:[#allocation2 + $0xa50] sm:$0xff] }
 0x217   :  { %787 = vmatpush2.msra.mxu0 %v739_v1  ;;  %v841_v1 = vld [vmem:[#allocation2 + $0xa48] sm:$0xff] }
 0x218   :  { %788 = vmatprep.subr.mxu0 %v738_v2  ;;  %v840_v2 = vld [vmem:[#allocation2 + $0xa40] sm:$0xff] }
 0x219   :  { %789 = vmatpush2.msra.mxu0 %v737_v3  ;;  %v839_v3 = vld [vmem:[#allocation2 + $0xa38] sm:$0xff] }
 0x21a   :  { %790 = vmatprep.subr.mxu0 %v736_v4  ;;  %v838_v4 = vld [vmem:[#allocation2 + $0xa30] sm:$0xff] }
 0x21b   :  { %791 = vmatpush2.msra.mxu0 %v735_v5  ;;  %v837_v5 = vld [vmem:[#allocation2 + $0xa28] sm:$0xff] }
 0x21c   :  { %792 = vmatprep.subr.mxu0 %v734_v6  ;;  %v836_v6 = vld [vmem:[#allocation2 + $0xa20] sm:$0xff] }
 0x21d   :  { %793 = vmatpush2.msra.mxu0 %v733_v7  ;;  %v835_v7 = vld [vmem:[#allocation2 + $0xa18] sm:$0xff] }
 0x21e   :  { %794 = vmatprep.subr.mxu0 %v732_v8  ;;  %v834_v8 = vld [vmem:[#allocation2 + $0xa10] sm:$0xff] }
 0x21f   :  { %795 = vmatpush2.msra.mxu0 %v731_v9  ;;  %v833_v9 = vld [vmem:[#allocation2 + $0xa08] sm:$0xff] }
 0x220   :  { %796 = vmatprep.subr.mxu0 %v730_v10  ;;  %v832_v10 = vld [vmem:[#allocation2 + $0xa00] sm:$0xff] }
 0x221   :  { %797 = vmatpush2.msra.mxu0 %v729_v11  ;;  %v895_v11 = vld [vmem:[#allocation2 + $0xbf8] sm:$0xff] }
 0x222   :  { %798 = vmatprep.subr.mxu0 %v728_v12  ;;  %v894_v12 = vld [vmem:[#allocation2 + $0xbf0] sm:$0xff] }
 0x223   :  { %799 = vmatpush2.msra.mxu0 %v727_v13  ;;  %v893_v13 = vld [vmem:[#allocation2 + $0xbe8] sm:$0xff] }
 0x224   :  { %800 = vmatprep.subr.mxu0 %v726_v14  ;;  %v892_v14 = vld [vmem:[#allocation2 + $0xbe0] sm:$0xff] }
 0x225   :  { %801 = vmatpush2.msra.mxu0 %v725_v26  ;;  %v882_v26 = vld [vmem:[#allocation2 + $0xb90] sm:$0xff] }
 0x226   :  { %802 = vmatprep.subr.mxu0 %v724_v28  ;;  %v881_v28 = vld [vmem:[#allocation2 + $0xb88] sm:$0xff] }
 0x227   :  { %803 = vmatpush2.msra.mxu0 %v723_v29  ;;  %v587_v29 = vld [vmem:[#allocation4 + $0x6] sm:$0x3] }
 0x228   :  { %804 = vmatprep.subr.mxu0 %v722_v30  ;;  %v592_v30 = vrot.slane %v587_v29, %v1114_v41 }
 0x229   :  { %805 = vmatpush2.msra.mxu0 %v721_v31  ;;  %v596_v31 = vrot.slane %v587_v29, %v1104_v23 }
 0x22a   :  { %806 = vmatprep.subr.mxu0 %v720_v32 }
 0x22b   :  { %807 = vmatpush2.msra.mxu0 %v719_v33 }
 0x22c   :  { %808 = vmatprep.subr.mxu0 %v718_v34 }
 0x22d   :  { %809 = vmatpush2.msra.mxu0 %v717_v35 }
 0x22e   :  { %810 = vmatprep.subr.mxu0 %v716_v36 }
 0x22f   :  { %811 = vmatpush2.msra.mxu0 %v715_v37 }
 0x230   :  { %812 = vmatprep.subr.mxu0 %v714_v38  ;;  %v880_v38 = vld [vmem:[#allocation2 + $0xb80] sm:$0xff] }
 0x231   :  { %813 = vmatpush2.msra.mxu0 %v713_v39  ;;  %v879_v39 = vld [vmem:[#allocation2 + $0xb78] sm:$0xff] }
 0x232   :  { %814 = vmatprep.subr.mxu0 %v712_v40  ;;  %v878_v40 = vld [vmem:[#allocation2 + $0xb70] sm:$0xff] }
 0x233   :  { %815 = vmatpush2.msra.mxu0 %v711_v42  ;;  %v877_v42 = vld [vmem:[#allocation2 + $0xb68] sm:$0xff] }
 0x234   :  { %816 = vmatprep.subr.mxu0 %v710_v43  ;;  %v876_v43 = vld [vmem:[#allocation2 + $0xb60] sm:$0xff] }
 0x235   :  { %817 = vmatpush2.msra.mxu0 %v709_v44  ;;  %v875_v44 = vld [vmem:[#allocation2 + $0xb58] sm:$0xff] }
 0x2b6   :  { %v510_v19 = vpop.f32.mrf.mxu0 }
 0x2b7   :  { %v511_v20 = vadd.f32 %v510_v19, %v437_v16  ;;  %v890_v16 = vld [vmem:[#allocation2 + $0xbd0] sm:$0xff]  ;;  %v888_v19 = vld [vmem:[#allocation2 + $0xbc0] sm:$0xff] }
 0x2b8   :  { %v512_v21 = vpop.f32.mrf.mxu0 }
 0x2b9   :  { %1012 = vtanh.f32 %v511_v20  ;;  %v513_v22 = vadd.f32 %v512_v21, %v441_v17  ;;  %v889_v17 = vld [vmem:[#allocation2 + $0xbc8] sm:$0xff]  ;;  %v887_v20 = vld [vmem:[#allocation2 + $0xbb8] sm:$0xff]  ;;  %v886_v21 = vld [vmem:[#allocation2 + $0xbb0] sm:$0xff] }
 0x2bb   :  { %v518_v24 = vmax.f32 %v513_v22, 0.0  ;;  %v885_v22 = vld [vmem:[#allocation2 + $0xba8] sm:$0xff] }
 0x2bd   :  { %663 = vmatprep.mubr.f32.mxu1 %v518_v24  ;;  %v884_v24 = vld [vmem:[#allocation2 + $0xba0] sm:$0xff] }
 0x2c6   :  { %v1013_v25 = vpop.eup %1012 }
 0x2c7   :  { %664 = vmatmul.mubr.f32.vlgmr.msra.gmra.mxu1 %v1013_v25  ;;  %v883_v25 = vld [vmem:[#allocation2 + $0xb98] sm:$0xff] }
 0x2c8   :  { %910 = vmatpush1.msra.mxu1 %v862_v46  ;;  %v873_v46 = vld [vmem:[#allocation2 + $0xb48] sm:$0xff] }
 0x2c9   :  { %911 = vmatprep.subr.mxu1 %v861_v47  ;;  %v872_v47 = vld [vmem:[#allocation2 + $0xb40] sm:$0xff] }
 0x2ca   :  { %912 = vmatpush1.msra.mxu1 %v860_v48  ;;  %v871_v48 = vld [vmem:[#allocation2 + $0xb38] sm:$0xff] }
 0x2cb   :  { %913 = vmatprep.subr.mxu1 %v859_v49  ;;  %v870_v49 = vld [vmem:[#allocation2 + $0xb30] sm:$0xff] }
 0x2cc   :  { %914 = vmatpush1.msra.mxu1 %v858_v18  ;;  %v869_v18 = vld [vmem:[#allocation2 + $0xb28] sm:$0xff] }
 0x2cd   :  { %915 = vmatprep.subr.mxu1 %v857_v50  ;;  %v868_v50 = vld [vmem:[#allocation2 + $0xb20] sm:$0xff] }
 0x2ce   :  { %916 = vmatpush1.msra.mxu1 %v856_v51  ;;  %v867_v51 = vld [vmem:[#allocation2 + $0xb18] sm:$0xff] }
 0x2cf   :  { %917 = vmatprep.subr.mxu1 %v855_v52  ;;  %v866_v52 = vld [vmem:[#allocation2 + $0xb10] sm:$0xff] }
 0x2d0   :  { %918 = vmatpush1.msra.mxu1 %v854_v53  ;;  %v865_v53 = vld [vmem:[#allocation2 + $0xb08] sm:$0xff] }
 0x2d1   :  { %919 = vmatprep.subr.mxu1 %v853_v54  ;;  %v864_v54 = vld [vmem:[#allocation2 + $0xb00] sm:$0xff] }
 0x2d2   :  { %920 = vmatpush1.msra.mxu1 %v852_v55  ;;  %v742_v55 = vld [vmem:[#allocation4 + $0x8] sm:$0x3] }
 0x2d3   :  { %921 = vmatprep.subr.mxu1 %v851_v56  ;;  %v747_v56 = vrot.slane %v742_v55, %v1114_v41 }
 0x2d4   :  { %922 = vmatpush1.msra.mxu1 %v850_v27  ;;  %v751_v27 = vrot.slane %v742_v55, %v1104_v23 }
 0x2d5   :  { %923 = vmatprep.subr.mxu1 %v849_v57 }
 0x2d6   :  { %924 = vmatpush1.msra.mxu1 %v848_v58 }
 0x2d7   :  { %925 = vmatprep.subr.mxu1 %v847_v59 }
 0x2d8   :  { %926 = vmatpush1.msra.mxu1 %v846_v60 }
 0x2d9   :  { %927 = vmatprep.subr.mxu1 %v845_v61 }
 0x2da   :  { %928 = vmatpush1.msra.mxu1 %v844_v62 }
 0x2db   :  { %929 = vmatprep.subr.mxu1 %v843_v63  ;;  %v897_v63 = vld [vmem:[#allocation4 + $0xa] sm:$0x3] }
 0x2dc   :  { %930 = vmatpush1.msra.mxu1 %v842_v0  ;;  %v906_v0 = vrot.slane %v897_v63, %v1104_v23 }
 0x2dd   :  { %931 = vmatprep.subr.mxu1 %v841_v1 }
 0x2de   :  { %932 = vmatpush1.msra.mxu1 %v840_v2 }
 0x2df   :  { %933 = vmatprep.subr.mxu1 %v839_v3 }
 0x2e0   :  { %934 = vmatpush1.msra.mxu1 %v838_v4 }
 0x2e1   :  { %935 = vmatprep.subr.mxu1 %v837_v5 }
 0x2e2   :  { %936 = vmatpush1.msra.mxu1 %v836_v6  ;;  %v902_v6 = vrot.slane %v897_v63, %v1114_v41 }
 0x2e3   :  { %937 = vmatprep.subr.mxu1 %v835_v7 }
 0x2e4   :  { %938 = vmatpush1.msra.mxu1 %v834_v8  ;;  %v984_v8 = vld [vmem:[%s1137_s1] sm:$0x1] }
 0x2e5   :  { %939 = vmatprep.subr.mxu1 %v833_v9 }
 0x2e6   :  { %940 = vmatpush1.msra.mxu1 %v832_v10 }
 0x2e7   :  { %941 = vmatprep.subr.mxu1 %v895_v11 }
 0x2e8   :  { %942 = vmatpush2.msra.mxu1 %v894_v12 }
 0x2e9   :  { %943 = vmatprep.subr.mxu1 %v893_v13 }
 0x2ea   :  { %944 = vmatpush2.msra.mxu1 %v892_v14 }
 0x2eb   :  { %945 = vmatprep.subr.mxu1 %v891_v15 }
 0x2ec   :  { %946 = vmatpush2.msra.mxu1 %v890_v16 }
 0x2ed   :  { %947 = vmatprep.subr.mxu1 %v889_v17 }
 0x2ee   :  { %948 = vmatpush2.msra.mxu1 %v888_v19 }
 0x2ef   :  { %949 = vmatprep.subr.mxu1 %v887_v20 }
 0x2f0   :  { %950 = vmatpush2.msra.mxu1 %v886_v21 }
 0x2f1   :  { %951 = vmatprep.subr.mxu1 %v885_v22 }
 0x2f2   :  { %952 = vmatpush2.msra.mxu1 %v884_v24 }
 0x2f3   :  { %953 = vmatprep.subr.mxu1 %v883_v25 }
 0x2f4   :  { %954 = vmatpush2.msra.mxu1 %v882_v26 }
 0x2f5   :  { %955 = vmatprep.subr.mxu1 %v881_v28 }
 0x2f6   :  { %956 = vmatpush2.msra.mxu1 %v880_v38 }
 0x2f7   :  { %957 = vmatprep.subr.mxu1 %v879_v39 }
 0x2f8   :  { %958 = vmatpush2.msra.mxu1 %v878_v40 }
 0x2f9   :  { %959 = vmatprep.subr.mxu1 %v877_v42 }
 0x2fa   :  { %960 = vmatpush2.msra.mxu1 %v876_v43 }
 0x2fb   :  { %961 = vmatprep.subr.mxu1 %v875_v44 }
 0x2fc   :  { %962 = vmatpush2.msra.mxu1 %v874_v45 }
 0x2fd   :  { %963 = vmatprep.subr.mxu1 %v873_v46 }
 0x2fe   :  { %964 = vmatpush2.msra.mxu1 %v872_v47 }
 0x2ff   :  { %965 = vmatprep.subr.mxu1 %v871_v48 }
 0x300   :  { %966 = vmatpush2.msra.mxu1 %v870_v49 }
 0x301   :  { %967 = vmatprep.subr.mxu1 %v869_v18 }
 0x302   :  { %968 = vmatpush2.msra.mxu1 %v868_v50 }
 0x303   :  { %969 = vmatprep.subr.mxu1 %v867_v51 }
 0x304   :  { %970 = vmatpush2.msra.mxu1 %v866_v52 }
 0x305   :  { %971 = vmatprep.subr.mxu1 %v865_v53 }
 0x306   :  { %972 = vmatpush2.msra.mxu1 %v864_v54 }
 0x387   :  { %v665_v32 = vpop.f32.mrf.mxu1 }
 0x388   :  { %v666_v33 = vadd.f32 %v665_v32, %v592_v30 }
 0x389   :  { %v667_v34 = vpop.f32.mrf.mxu1 }
 0x38a   :  { %1014 = vtanh.f32 %v666_v33  ;;  %v668_v35 = vadd.f32 %v667_v34, %v596_v31 }
 0x38c   :  { %v673_v36 = vmax.f32 %v668_v35, 0.0 }
 0x38e   :  { %818 = vmatprep.mubr.f32.mxu0 %v673_v36 }
 0x397   :  { %v1015_v37 = vpop.eup %1014 }
 0x398   :  { %819 = vmatmul.mubr.f32.vlgmr.msra.gmra.mxu0 %v1015_v37 }
 0x458   :  { %v820_v57 = vpop.f32.mrf.mxu0 }
 0x459   :  { %v821_v58 = vadd.f32 %v820_v57, %v747_v56 }
 0x45a   :  { %v822_v59 = vpop.f32.mrf.mxu0 }
 0x45b   :  { %1016 = vtanh.f32 %v821_v58  ;;  %v823_v60 = vadd.f32 %v822_v59, %v751_v27 }
 0x45d   :  { %v828_v61 = vmax.f32 %v823_v60, 0.0 }
 0x45f   :  { %973 = vmatprep.mubr.f32.mxu1 %v828_v61 }
 0x468   :  { %v1017_v62 = vpop.eup %1016 }
 0x469   :  { %974 = vmatmul.mubr.f32.vlgmr.msra.gmra.mxu1 %v1017_v62 }
 0x529   :  { %v975_v1 = vpop.f32.mrf.mxu1 }
 0x52a   :  { %v976_v9 = vadd.f32 %v975_v1, %v902_v6 }
 0x52b   :  { %v977_v2 = vpop.f32.mrf.mxu1 }
 0x52c   :  { %v978_v3 = vadd.f32 %v977_v2, %v906_v0  ;;  %v988_v12 = vrot.slane %v976_v9, 7 }
 0x52e   :  { %v980_v4 = vmul.f32 0.5, %v978_v3  ;;  %v991_v23 = vrot.slane %v978_v3, 6 }
 0x530   :  { %v981_v5 = vmul.f32 1.442695, %v980_v4 }
 0x532   :  { %1018 = vpow2.f32 %v981_v5 }
 0x53f   :  { %v1019_v7 = vpop.eup %1018 }
 0x540   :  { %v983_v10 = vadd.f32 1e-05, %v1019_v7 }
 0x542   :  { %v985_v11 = vmul.f32 %v984_v8, %v983_v10 }
 0x544   :  { %v986_v13 = vadd.f32 %v985_v11, %v976_v9 }
 0x546   :  { %v994_v14 = vsel %vm993_vm0, %v986_v13, %v988_v12 }
 0x547   :  { %v996_v15 = vsel %vm995_vm1, %v994_v14, %v991_v23 }
 0x548   :  { %997 = vst [vmem:[%s1140_s4] sm:$0x7] %v996_v15 }
 0x549   :  { %1002 = vsyncpa [#allocation3], 1 }
 0x54a   :  { %1003 = vsyncpa [#allocation5], 1 }

</bundles_post_ra>
